<compile_context>
chip_gen: v5e
topology: v5e:2x2
jax: 0.10.0
libtpu: 0.0.40
codegen_flags: <defaults>
</compile_context>

<pallas_src>
import jax
import jax.numpy as jnp
from jax import lax
from jax.experimental import pallas as pl
from jax.experimental.pallas import tpu as pltpu


def _round_up(n, m):
    return ((n + m - 1) // m) * m


def _choose_images_per_step(N, HW, cpad, Cin, Cout):
    """Largest B with N % B == 0, grid >= 2 when N >= 2, and VMEM in budget."""
    K = 9 * cpad + 1
    # Rough per-image f32 footprint: live activations (x, x_f, h*), the im2col
    # value, and double-buffered I/O blocks.
    per_image = 4 * HW * (6 * cpad + K + 2 * (Cin + Cout))
    budget = 20 * 1024 * 1024          # stay well under v7x's 32 MiB scoped VMEM
    bmax = max(1, min(N, budget // max(per_image, 1)))
    best = 1
    for b in range(1, bmax + 1):
        if N % b == 0 and (N // b) >= 2:   # keep >= 2 grid steps for v7x's 2 TCs
            best = b
    return best


def _make_rconv_kernel(H, W, B, Cin, Cout, cpad):
    HW = H * W
    lanes = B * HW

    def kernel(x_ref, w1_ref, w2_ref, o_ref):
        # Static validity masks, built once per grid step, reused by all 4
        # convs.  (No integer division: only mod + comparisons, which lower
        # cleanly on the VPU.)
        pos = lax.broadcasted_iota(jnp.int32, (1, lanes), 1) % HW  # pos in image
        col = pos % W
        ok_l = col != 0                  # tap ox == -1 valid
        ok_r = col != (W - 1)            # tap ox == +1 valid
        ok_u = pos >= W                  # tap oy == -1 valid (row != 0)
        ok_d = pos < (HW - W)            # tap oy == +1 valid (row != H-1)
        ones_row = jnp.ones((1, lanes), jnp.float32)   # bias row of im2col

        def conv3x3(a, w_ref):
            # a: (c, B*HW) f32.  Returns (Cout, B*HW) f32 (bias included).
            c = a.shape[0]
            if c < cpad:
                # Pad channels once with true zeros (review opt #3; also keeps
                # the matmul free of any stale/uninitialized rows).
                a = jnp.concatenate(
                    [a, jnp.zeros((cpad - c, lanes), jnp.float32)], axis=0)
            taps = []
            for oy in (-1, 0, 1):
                for ox in (-1, 0, 1):
                    off = oy * W + ox
                    if off == 0:
                        t = a
                    else:
                        # out[i] = a[i + off]  (jnp.roll convention: shift=-off)
                        t = pltpu.roll(a, (-off) % lanes, 1)
                    m = None
                    if oy == -1:
                        m = ok_u
                    elif oy == 1:
                        m = ok_d
                    if ox == -1:
                        m = ok_l if m is None else jnp.logical_and(m, ok_l)
                    elif ox == 1:
                        m = ok_r if m is None else jnp.logical_and(m, ok_r)
                    if m is not None:
                        t = jnp.where(m, t, 0.0)
                    taps.append(t)
            taps.append(ones_row)
            p = jnp.concatenate(taps, axis=0)        # (9*cpad + 1, B*HW)
            # One fused MXU matmul per conv; bias folded via the ones row.
            return jnp.dot(w_ref[...], p, preferred_element_type=jnp.float32)

        x = x_ref[...].astype(jnp.float32)
        x_f = conv3x3(x, w1_ref)
        h1 = conv3x3(x_f, w2_ref)
        h2 = conv3x3(h1, w2_ref) + x_f
        h3 = conv3x3(h2, w2_ref) + x_f
        o_ref[...] = h3.astype(o_ref.dtype)

    return kernel


def _pack_weight_bias(w_oihw, b, cpad):
    """(Cout, Cin, 3, 3) OIHW + (Cout,) bias -> (Cout, 9*cpad + 1).

    Column (dy*3 + dx)*cpad + c holds w[co, c, dy, dx] (Cin zero-padded to
    cpad); the final column holds the bias (matches the ones row of im2col).
    """
    co, ci, kh, kw = w_oihw.shape
    w = jnp.transpose(w_oihw, (2, 3, 1, 0))                    # (3, 3, Cin, Cout)
    w = jnp.pad(w, ((0, 0), (0, 0), (0, cpad - ci), (0, 0)))   # Cin -> cpad
    w = w.reshape(kh * kw * cpad, co)                          # (9*cpad, Cout)
    w = jnp.concatenate([w, b.reshape(1, co)], axis=0)         # (9*cpad+1, Cout)
    return jnp.transpose(w)                                    # (Cout, 9*cpad+1)


def rconv_pallas(x_nchw, w1, b1, w2, b2, images_per_step=None):
    """x: (N, Cin, H, W); w1: (Cout, Cin, 3, 3); w2: (Cout, Cout, 3, 3) (OIHW,
    as in nn.Conv2d); b1, b2: (Cout,).  Returns (N, Cout, H, W)."""
    N, Cin, H, W = x_nchw.shape
    Cout = w1.shape[0]
    HW = H * W
    cpad = _round_up(max(Cin, Cout), 8)     # single channel pad for all convs
    K = 9 * cpad + 1

    if images_per_step is None:
        images_per_step = _choose_images_per_step(N, HW, cpad, Cin, Cout)
    B = images_per_step
    assert N % B == 0, "images_per_step must divide the batch"
    G = N // B
    lanes = B * HW

    # NCHW -> (Cin, N*H*W): images concatenated along the lane axis.  One tiny
    # XLA transpose of x / the output buys lane-dense batched matmuls inside.
    x2 = jnp.transpose(x_nchw.reshape(N, Cin, HW), (1, 0, 2)).reshape(Cin, N * HW)
    w1m = _pack_weight_bias(w1, b1, cpad)
    w2m = _pack_weight_bias(w2, b2, cpad)

    kernel = _make_rconv_kernel(H, W, B, Cin, Cout, cpad)

    flops = int(4 * 2 * Cout * K * N * HW)                       # 4 convs
    bytes_accessed = int(4 * (x2.size + Cout * N * HW + w1m.size + w2m.size))

    out2 = pl.pallas_call(
        kernel,
        out_shape=jax.ShapeDtypeStruct((Cout, N * HW), x_nchw.dtype),
        grid=(G,),
        in_specs=[
            pl.BlockSpec((Cin, lanes), lambda g: (0, g)),
            pl.BlockSpec((Cout, K), lambda g: (0, 0)),
            pl.BlockSpec((Cout, K), lambda g: (0, 0)),
        ],
        out_specs=pl.BlockSpec((Cout, lanes), lambda g: (0, g)),
        compiler_params=pltpu.CompilerParams(
            dimension_semantics=("parallel",),
        ),
        cost_estimate=pl.CostEstimate(
            flops=flops, transcendentals=0, bytes_accessed=bytes_accessed),
    )(x2, w1m, w2m)

    return jnp.transpose(out2.reshape(Cout, N, H, W), (1, 0, 2, 3))


# ----------------------------- reference ------------------------------------
def _conv_ref(x_nchw, w_oihw, b):
    y = lax.conv_general_dilated(
        x_nchw, w_oihw, (1, 1), "SAME",
        dimension_numbers=("NCHW", "OIHW", "NCHW"),
        precision=lax.Precision.HIGHEST,
    )
    return y + b.reshape(1, -1, 1, 1)


def rconv_ref(x, w1, b1, w2, b2):
    x_f = _conv_ref(x, w1, b1)
    h1 = _conv_ref(x_f, w2, b2)
    h2 = _conv_ref(h1, w2, b2) + x_f
    h3 = _conv_ref(h2, w2, b2) + x_f
    return h3


if __name__ == "__main__":
    # Small shapes consistent with the module; N=4 exercises lane batching
    # (B=2 images per grid step) while keeping grid=2 (both v7x TensorCores).
    N, Cin, Cout, H, W = 4, 4, 8, 16, 16

    key = jax.random.PRNGKey(0)
    kx, kw1, kb1, kw2, kb2 = jax.random.split(key, 5)

    x = jax.random.normal(kx, (N, Cin, H, W), jnp.float32)
    # Synthetic parameters, OIHW like nn.Conv2d(3x3, padding=1, bias=True).
    w1 = 0.1 * jax.random.normal(kw1, (Cout, Cin, 3, 3), jnp.float32)
    b1 = 0.1 * jax.random.normal(kb1, (Cout,), jnp.float32)
    w2 = 0.1 * jax.random.normal(kw2, (Cout, Cout, 3, 3), jnp.float32)
    b2 = 0.1 * jax.random.normal(kb2, (Cout,), jnp.float32)

    out = rconv_pallas(x, w1, b1, w2, b2)
    out = jax.block_until_ready(out)

    ref = rconv_ref(x, w1, b1, w2, b2)
    assert out.shape == (N, Cout, H, W)
    max_err = float(jnp.max(jnp.abs(out - ref)))
    assert jnp.allclose(out, ref, atol=2e-4, rtol=2e-4), (
        f"mismatch vs reference, max err {max_err}")

    print("KERNEL_OK")
</pallas_src>

<mosaic_0001>
module attributes {stable_mosaic.version = 11 : i64} {
  func.func @kernel(%arg0: i32, %arg1: memref<4x512xf32, #tpu.memory_space<vmem>>, %arg2: memref<8x73xf32, #tpu.memory_space<vmem>>, %arg3: memref<8x73xf32, #tpu.memory_space<vmem>>, %arg4: memref<8x512xf32, #tpu.memory_space<vmem>>) attributes {dimension_semantics = [#tpu.dimension_semantics<parallel>], iteration_bounds = array<i64: 2>, scalar_prefetch = 0 : i64, scratch_operands = 0 : i64, tpu.core_type = #tpu.core_type<tc>, window_params = [{transform_indices = @transform_0, window_bounds = array<i64: 4, 512>}, {pipeline_mode = #tpu.pipeline_mode<synchronous>, transform_indices = @transform_1, window_bounds = array<i64: 8, 73>}, {pipeline_mode = #tpu.pipeline_mode<synchronous>, transform_indices = @transform_2, window_bounds = array<i64: 8, 73>}, {transform_indices = @transform_3, window_bounds = array<i64: 8, 512>}]} {
    %0 = tpu.iota {dimensions = array<i32: 1>} : vector<1x512xi32>
    %c256_i32 = arith.constant 256 : i32
    %c0_i32 = arith.constant 0 : i32
    %1 = arith.cmpi eq, %c256_i32, %c0_i32 : i32
    %c1_i32 = arith.constant 1 : i32
    %2 = arith.select %1, %c1_i32, %c256_i32 : i32
    %3 = vector.broadcast %2 : i32 to vector<1x512xi32>
    %4 = arith.remsi %0, %3 : vector<1x512xi32>
    %c0_i32_0 = arith.constant 0 : i32
    %5 = vector.broadcast %c0_i32_0 : i32 to vector<1x512xi32>
    %6 = arith.cmpi ne, %4, %5 : vector<1x512xi32>
    %c0_i32_1 = arith.constant 0 : i32
    %7 = vector.broadcast %c0_i32_1 : i32 to vector<1x512xi32>
    %8 = arith.cmpi slt, %4, %7 : vector<1x512xi32>
    %c0_i32_2 = arith.constant 0 : i32
    %9 = arith.cmpi slt, %2, %c0_i32_2 : i32
    %10 = vector.broadcast %9 : i1 to vector<1x512xi1>
    %11 = vector.broadcast %10 : vector<1x512xi1> to vector<1x512xi1>
    %12 = arith.xori %8, %11 : vector<1x512xi1>
    %13 = arith.andi %12, %6 : vector<1x512xi1>
    %14 = vector.broadcast %2 : i32 to vector<1x512xi32>
    %15 = arith.addi %4, %14 : vector<1x512xi32>
    %16 = arith.select %13, %15, %4 : vector<1x512xi1>, vector<1x512xi32>
    %c16_i32 = arith.constant 16 : i32
    %c0_i32_3 = arith.constant 0 : i32
    %17 = arith.cmpi eq, %c16_i32, %c0_i32_3 : i32
    %c1_i32_4 = arith.constant 1 : i32
    %18 = arith.select %17, %c1_i32_4, %c16_i32 : i32
    %19 = vector.broadcast %18 : i32 to vector<1x512xi32>
    %20 = arith.remsi %16, %19 : vector<1x512xi32>
    %c0_i32_5 = arith.constant 0 : i32
    %21 = vector.broadcast %c0_i32_5 : i32 to vector<1x512xi32>
    %22 = arith.cmpi ne, %20, %21 : vector<1x512xi32>
    %c0_i32_6 = arith.constant 0 : i32
    %23 = vector.broadcast %c0_i32_6 : i32 to vector<1x512xi32>
    %24 = arith.cmpi slt, %20, %23 : vector<1x512xi32>
    %c0_i32_7 = arith.constant 0 : i32
    %25 = arith.cmpi slt, %18, %c0_i32_7 : i32
    %26 = vector.broadcast %25 : i1 to vector<1x512xi1>
    %27 = vector.broadcast %26 : vector<1x512xi1> to vector<1x512xi1>
    %28 = arith.xori %24, %27 : vector<1x512xi1>
    %29 = arith.andi %28, %22 : vector<1x512xi1>
    %30 = vector.broadcast %18 : i32 to vector<1x512xi32>
    %31 = arith.addi %20, %30 : vector<1x512xi32>
    %32 = arith.select %29, %31, %20 : vector<1x512xi1>, vector<1x512xi32>
    %c0_i32_8 = arith.constant 0 : i32
    %33 = vector.broadcast %c0_i32_8 : i32 to vector<1x512xi32>
    %34 = arith.cmpi ne, %32, %33 : vector<1x512xi32>
    %c15_i32 = arith.constant 15 : i32
    %35 = vector.broadcast %c15_i32 : i32 to vector<1x512xi32>
    %36 = arith.cmpi ne, %32, %35 : vector<1x512xi32>
    %c16_i32_9 = arith.constant 16 : i32
    %37 = vector.broadcast %c16_i32_9 : i32 to vector<1x512xi32>
    %38 = arith.cmpi sge, %16, %37 : vector<1x512xi32>
    %c240_i32 = arith.constant 240 : i32
    %39 = vector.broadcast %c240_i32 : i32 to vector<1x512xi32>
    %40 = arith.cmpi slt, %16, %39 : vector<1x512xi32>
    %cst = arith.constant 1.000000e+00 : f32
    %41 = vector.broadcast %cst : f32 to vector<1x512xf32>
    %c0 = arith.constant 0 : index
    %c0_10 = arith.constant 0 : index
    %42 = vector.load %arg1[%c0, %c0_10] : memref<4x512xf32, #tpu.memory_space<vmem>>, vector<4x512xf32>
    %cst_11 = arith.constant 0.000000e+00 : f32
    %43 = vector.broadcast %cst_11 : f32 to vector<4x512xf32>
    %44 = tpu.concatenate %42, %43 in 0 : vector<4x512xf32>, vector<4x512xf32> -> vector<8x512xf32>
    %c17_i32 = arith.constant 17 : i32
    %45 = tpu.dynamic_rotate %44 by %c17_i32 dim 1 : vector<8x512xf32>, i32 -> vector<8x512xf32>
    %46 = arith.andi %38, %34 : vector<1x512xi1>
    %cst_12 = arith.constant 0.000000e+00 : f32
    %47 = vector.shape_cast %46 : vector<1x512xi1> to vector<1x512xi1>
    %48 = vector.broadcast %47 : vector<1x512xi1> to vector<8x512xi1>
    %49 = vector.broadcast %cst_12 : f32 to vector<8x512xf32>
    %50 = arith.select %48, %45, %49 : vector<8x512xi1>, vector<8x512xf32>
    %c16_i32_13 = arith.constant 16 : i32
    %51 = tpu.dynamic_rotate %44 by %c16_i32_13 dim 1 : vector<8x512xf32>, i32 -> vector<8x512xf32>
    %cst_14 = arith.constant 0.000000e+00 : f32
    %52 = vector.shape_cast %38 : vector<1x512xi1> to vector<1x512xi1>
    %53 = vector.broadcast %52 : vector<1x512xi1> to vector<8x512xi1>
    %54 = vector.broadcast %cst_14 : f32 to vector<8x512xf32>
    %55 = arith.select %53, %51, %54 : vector<8x512xi1>, vector<8x512xf32>
    %c15_i32_15 = arith.constant 15 : i32
    %56 = tpu.dynamic_rotate %44 by %c15_i32_15 dim 1 : vector<8x512xf32>, i32 -> vector<8x512xf32>
    %57 = arith.andi %38, %36 : vector<1x512xi1>
    %cst_16 = arith.constant 0.000000e+00 : f32
    %58 = vector.shape_cast %57 : vector<1x512xi1> to vector<1x512xi1>
    %59 = vector.broadcast %58 : vector<1x512xi1> to vector<8x512xi1>
    %60 = vector.broadcast %cst_16 : f32 to vector<8x512xf32>
    %61 = arith.select %59, %56, %60 : vector<8x512xi1>, vector<8x512xf32>
    %c1_i32_17 = arith.constant 1 : i32
    %62 = tpu.dynamic_rotate %44 by %c1_i32_17 dim 1 : vector<8x512xf32>, i32 -> vector<8x512xf32>
    %cst_18 = arith.constant 0.000000e+00 : f32
    %63 = vector.shape_cast %34 : vector<1x512xi1> to vector<1x512xi1>
    %64 = vector.broadcast %63 : vector<1x512xi1> to vector<8x512xi1>
    %65 = vector.broadcast %cst_18 : f32 to vector<8x512xf32>
    %66 = arith.select %64, %62, %65 : vector<8x512xi1>, vector<8x512xf32>
    %c511_i32 = arith.constant 511 : i32
    %67 = tpu.dynamic_rotate %44 by %c511_i32 dim 1 : vector<8x512xf32>, i32 -> vector<8x512xf32>
    %cst_19 = arith.constant 0.000000e+00 : f32
    %68 = vector.shape_cast %36 : vector<1x512xi1> to vector<1x512xi1>
    %69 = vector.broadcast %68 : vector<1x512xi1> to vector<8x512xi1>
    %70 = vector.broadcast %cst_19 : f32 to vector<8x512xf32>
    %71 = arith.select %69, %67, %70 : vector<8x512xi1>, vector<8x512xf32>
    %c497_i32 = arith.constant 497 : i32
    %72 = tpu.dynamic_rotate %44 by %c497_i32 dim 1 : vector<8x512xf32>, i32 -> vector<8x512xf32>
    %73 = arith.andi %40, %34 : vector<1x512xi1>
    %cst_20 = arith.constant 0.000000e+00 : f32
    %74 = vector.shape_cast %73 : vector<1x512xi1> to vector<1x512xi1>
    %75 = vector.broadcast %74 : vector<1x512xi1> to vector<8x512xi1>
    %76 = vector.broadcast %cst_20 : f32 to vector<8x512xf32>
    %77 = arith.select %75, %72, %76 : vector<8x512xi1>, vector<8x512xf32>
    %c496_i32 = arith.constant 496 : i32
    %78 = tpu.dynamic_rotate %44 by %c496_i32 dim 1 : vector<8x512xf32>, i32 -> vector<8x512xf32>
    %cst_21 = arith.constant 0.000000e+00 : f32
    %79 = vector.shape_cast %40 : vector<1x512xi1> to vector<1x512xi1>
    %80 = vector.broadcast %79 : vector<1x512xi1> to vector<8x512xi1>
    %81 = vector.broadcast %cst_21 : f32 to vector<8x512xf32>
    %82 = arith.select %80, %78, %81 : vector<8x512xi1>, vector<8x512xf32>
    %c495_i32 = arith.constant 495 : i32
    %83 = tpu.dynamic_rotate %44 by %c495_i32 dim 1 : vector<8x512xf32>, i32 -> vector<8x512xf32>
    %84 = arith.andi %40, %36 : vector<1x512xi1>
    %cst_22 = arith.constant 0.000000e+00 : f32
    %85 = vector.shape_cast %84 : vector<1x512xi1> to vector<1x512xi1>
    %86 = vector.broadcast %85 : vector<1x512xi1> to vector<8x512xi1>
    %87 = vector.broadcast %cst_22 : f32 to vector<8x512xf32>
    %88 = arith.select %86, %83, %87 : vector<8x512xi1>, vector<8x512xf32>
    %89 = tpu.concatenate %50, %55, %61, %66, %44, %71, %77, %82, %88, %41 in 0 : vector<8x512xf32>, vector<8x512xf32>, vector<8x512xf32>, vector<8x512xf32>, vector<8x512xf32>, vector<8x512xf32>, vector<8x512xf32>, vector<8x512xf32>, vector<8x512xf32>, vector<1x512xf32> -> vector<73x512xf32>
    %c0_23 = arith.constant 0 : index
    %c0_24 = arith.constant 0 : index
    %90 = vector.load %arg2[%c0_23, %c0_24] : memref<8x73xf32, #tpu.memory_space<vmem>>, vector<8x73xf32>
    %cst_25 = arith.constant dense<0.000000e+00> : vector<8x512xf32>
    %91 = tpu.matmul %90, %89, %cst_25 {dimension_numbers = #tpu.dot_dimension_numbers<[1], [0], [0], [1], [0, 0, 1, 1], [], []>} : vector<8x73xf32>, vector<73x512xf32>, vector<8x512xf32> -> vector<8x512xf32>
    %c17_i32_26 = arith.constant 17 : i32
    %92 = tpu.dynamic_rotate %91 by %c17_i32_26 dim 1 : vector<8x512xf32>, i32 -> vector<8x512xf32>
    %93 = arith.andi %38, %34 : vector<1x512xi1>
    %cst_27 = arith.constant 0.000000e+00 : f32
    %94 = vector.shape_cast %93 : vector<1x512xi1> to vector<1x512xi1>
    %95 = vector.broadcast %94 : vector<1x512xi1> to vector<8x512xi1>
    %96 = vector.broadcast %cst_27 : f32 to vector<8x512xf32>
    %97 = arith.select %95, %92, %96 : vector<8x512xi1>, vector<8x512xf32>
    %c16_i32_28 = arith.constant 16 : i32
    %98 = tpu.dynamic_rotate %91 by %c16_i32_28 dim 1 : vector<8x512xf32>, i32 -> vector<8x512xf32>
    %cst_29 = arith.constant 0.000000e+00 : f32
    %99 = vector.shape_cast %38 : vector<1x512xi1> to vector<1x512xi1>
    %100 = vector.broadcast %99 : vector<1x512xi1> to vector<8x512xi1>
    %101 = vector.broadcast %cst_29 : f32 to vector<8x512xf32>
    %102 = arith.select %100, %98, %101 : vector<8x512xi1>, vector<8x512xf32>
    %c15_i32_30 = arith.constant 15 : i32
    %103 = tpu.dynamic_rotate %91 by %c15_i32_30 dim 1 : vector<8x512xf32>, i32 -> vector<8x512xf32>
    %104 = arith.andi %38, %36 : vector<1x512xi1>
    %cst_31 = arith.constant 0.000000e+00 : f32
    %105 = vector.shape_cast %104 : vector<1x512xi1> to vector<1x512xi1>
    %106 = vector.broadcast %105 : vector<1x512xi1> to vector<8x512xi1>
    %107 = vector.broadcast %cst_31 : f32 to vector<8x512xf32>
    %108 = arith.select %106, %103, %107 : vector<8x512xi1>, vector<8x512xf32>
    %c1_i32_32 = arith.constant 1 : i32
    %109 = tpu.dynamic_rotate %91 by %c1_i32_32 dim 1 : vector<8x512xf32>, i32 -> vector<8x512xf32>
    %cst_33 = arith.constant 0.000000e+00 : f32
    %110 = vector.shape_cast %34 : vector<1x512xi1> to vector<1x512xi1>
    %111 = vector.broadcast %110 : vector<1x512xi1> to vector<8x512xi1>
    %112 = vector.broadcast %cst_33 : f32 to vector<8x512xf32>
    %113 = arith.select %111, %109, %112 : vector<8x512xi1>, vector<8x512xf32>
    %c511_i32_34 = arith.constant 511 : i32
    %114 = tpu.dynamic_rotate %91 by %c511_i32_34 dim 1 : vector<8x512xf32>, i32 -> vector<8x512xf32>
    %cst_35 = arith.constant 0.000000e+00 : f32
    %115 = vector.shape_cast %36 : vector<1x512xi1> to vector<1x512xi1>
    %116 = vector.broadcast %115 : vector<1x512xi1> to vector<8x512xi1>
    %117 = vector.broadcast %cst_35 : f32 to vector<8x512xf32>
    %118 = arith.select %116, %114, %117 : vector<8x512xi1>, vector<8x512xf32>
    %c497_i32_36 = arith.constant 497 : i32
    %119 = tpu.dynamic_rotate %91 by %c497_i32_36 dim 1 : vector<8x512xf32>, i32 -> vector<8x512xf32>
    %120 = arith.andi %40, %34 : vector<1x512xi1>
    %cst_37 = arith.constant 0.000000e+00 : f32
    %121 = vector.shape_cast %120 : vector<1x512xi1> to vector<1x512xi1>
    %122 = vector.broadcast %121 : vector<1x512xi1> to vector<8x512xi1>
    %123 = vector.broadcast %cst_37 : f32 to vector<8x512xf32>
    %124 = arith.select %122, %119, %123 : vector<8x512xi1>, vector<8x512xf32>
    %c496_i32_38 = arith.constant 496 : i32
    %125 = tpu.dynamic_rotate %91 by %c496_i32_38 dim 1 : vector<8x512xf32>, i32 -> vector<8x512xf32>
    %cst_39 = arith.constant 0.000000e+00 : f32
    %126 = vector.shape_cast %40 : vector<1x512xi1> to vector<1x512xi1>
    %127 = vector.broadcast %126 : vector<1x512xi1> to vector<8x512xi1>
    %128 = vector.broadcast %cst_39 : f32 to vector<8x512xf32>
    %129 = arith.select %127, %125, %128 : vector<8x512xi1>, vector<8x512xf32>
    %c495_i32_40 = arith.constant 495 : i32
    %130 = tpu.dynamic_rotate %91 by %c495_i32_40 dim 1 : vector<8x512xf32>, i32 -> vector<8x512xf32>
    %131 = arith.andi %40, %36 : vector<1x512xi1>
    %cst_41 = arith.constant 0.000000e+00 : f32
    %132 = vector.shape_cast %131 : vector<1x512xi1> to vector<1x512xi1>
    %133 = vector.broadcast %132 : vector<1x512xi1> to vector<8x512xi1>
    %134 = vector.broadcast %cst_41 : f32 to vector<8x512xf32>
    %135 = arith.select %133, %130, %134 : vector<8x512xi1>, vector<8x512xf32>
    %136 = tpu.concatenate %97, %102, %108, %113, %91, %118, %124, %129, %135, %41 in 0 : vector<8x512xf32>, vector<8x512xf32>, vector<8x512xf32>, vector<8x512xf32>, vector<8x512xf32>, vector<8x512xf32>, vector<8x512xf32>, vector<8x512xf32>, vector<8x512xf32>, vector<1x512xf32> -> vector<73x512xf32>
    %c0_42 = arith.constant 0 : index
    %c0_43 = arith.constant 0 : index
    %137 = vector.load %arg3[%c0_42, %c0_43] : memref<8x73xf32, #tpu.memory_space<vmem>>, vector<8x73xf32>
    %cst_44 = arith.constant dense<0.000000e+00> : vector<8x512xf32>
    %138 = tpu.matmul %137, %136, %cst_44 {dimension_numbers = #tpu.dot_dimension_numbers<[1], [0], [0], [1], [0, 0, 1, 1], [], []>} : vector<8x73xf32>, vector<73x512xf32>, vector<8x512xf32> -> vector<8x512xf32>
    %c17_i32_45 = arith.constant 17 : i32
    %139 = tpu.dynamic_rotate %138 by %c17_i32_45 dim 1 : vector<8x512xf32>, i32 -> vector<8x512xf32>
    %140 = arith.andi %38, %34 : vector<1x512xi1>
    %cst_46 = arith.constant 0.000000e+00 : f32
    %141 = vector.shape_cast %140 : vector<1x512xi1> to vector<1x512xi1>
    %142 = vector.broadcast %141 : vector<1x512xi1> to vector<8x512xi1>
    %143 = vector.broadcast %cst_46 : f32 to vector<8x512xf32>
    %144 = arith.select %142, %139, %143 : vector<8x512xi1>, vector<8x512xf32>
    %c16_i32_47 = arith.constant 16 : i32
    %145 = tpu.dynamic_rotate %138 by %c16_i32_47 dim 1 : vector<8x512xf32>, i32 -> vector<8x512xf32>
    %cst_48 = arith.constant 0.000000e+00 : f32
    %146 = vector.shape_cast %38 : vector<1x512xi1> to vector<1x512xi1>
    %147 = vector.broadcast %146 : vector<1x512xi1> to vector<8x512xi1>
    %148 = vector.broadcast %cst_48 : f32 to vector<8x512xf32>
    %149 = arith.select %147, %145, %148 : vector<8x512xi1>, vector<8x512xf32>
    %c15_i32_49 = arith.constant 15 : i32
    %150 = tpu.dynamic_rotate %138 by %c15_i32_49 dim 1 : vector<8x512xf32>, i32 -> vector<8x512xf32>
    %151 = arith.andi %38, %36 : vector<1x512xi1>
    %cst_50 = arith.constant 0.000000e+00 : f32
    %152 = vector.shape_cast %151 : vector<1x512xi1> to vector<1x512xi1>
    %153 = vector.broadcast %152 : vector<1x512xi1> to vector<8x512xi1>
    %154 = vector.broadcast %cst_50 : f32 to vector<8x512xf32>
    %155 = arith.select %153, %150, %154 : vector<8x512xi1>, vector<8x512xf32>
    %c1_i32_51 = arith.constant 1 : i32
    %156 = tpu.dynamic_rotate %138 by %c1_i32_51 dim 1 : vector<8x512xf32>, i32 -> vector<8x512xf32>
    %cst_52 = arith.constant 0.000000e+00 : f32
    %157 = vector.shape_cast %34 : vector<1x512xi1> to vector<1x512xi1>
    %158 = vector.broadcast %157 : vector<1x512xi1> to vector<8x512xi1>
    %159 = vector.broadcast %cst_52 : f32 to vector<8x512xf32>
    %160 = arith.select %158, %156, %159 : vector<8x512xi1>, vector<8x512xf32>
    %c511_i32_53 = arith.constant 511 : i32
    %161 = tpu.dynamic_rotate %138 by %c511_i32_53 dim 1 : vector<8x512xf32>, i32 -> vector<8x512xf32>
    %cst_54 = arith.constant 0.000000e+00 : f32
    %162 = vector.shape_cast %36 : vector<1x512xi1> to vector<1x512xi1>
    %163 = vector.broadcast %162 : vector<1x512xi1> to vector<8x512xi1>
    %164 = vector.broadcast %cst_54 : f32 to vector<8x512xf32>
    %165 = arith.select %163, %161, %164 : vector<8x512xi1>, vector<8x512xf32>
    %c497_i32_55 = arith.constant 497 : i32
    %166 = tpu.dynamic_rotate %138 by %c497_i32_55 dim 1 : vector<8x512xf32>, i32 -> vector<8x512xf32>
    %167 = arith.andi %40, %34 : vector<1x512xi1>
    %cst_56 = arith.constant 0.000000e+00 : f32
    %168 = vector.shape_cast %167 : vector<1x512xi1> to vector<1x512xi1>
    %169 = vector.broadcast %168 : vector<1x512xi1> to vector<8x512xi1>
    %170 = vector.broadcast %cst_56 : f32 to vector<8x512xf32>
    %171 = arith.select %169, %166, %170 : vector<8x512xi1>, vector<8x512xf32>
    %c496_i32_57 = arith.constant 496 : i32
    %172 = tpu.dynamic_rotate %138 by %c496_i32_57 dim 1 : vector<8x512xf32>, i32 -> vector<8x512xf32>
    %cst_58 = arith.constant 0.000000e+00 : f32
    %173 = vector.shape_cast %40 : vector<1x512xi1> to vector<1x512xi1>
    %174 = vector.broadcast %173 : vector<1x512xi1> to vector<8x512xi1>
    %175 = vector.broadcast %cst_58 : f32 to vector<8x512xf32>
    %176 = arith.select %174, %172, %175 : vector<8x512xi1>, vector<8x512xf32>
    %c495_i32_59 = arith.constant 495 : i32
    %177 = tpu.dynamic_rotate %138 by %c495_i32_59 dim 1 : vector<8x512xf32>, i32 -> vector<8x512xf32>
    %178 = arith.andi %40, %36 : vector<1x512xi1>
    %cst_60 = arith.constant 0.000000e+00 : f32
    %179 = vector.shape_cast %178 : vector<1x512xi1> to vector<1x512xi1>
    %180 = vector.broadcast %179 : vector<1x512xi1> to vector<8x512xi1>
    %181 = vector.broadcast %cst_60 : f32 to vector<8x512xf32>
    %182 = arith.select %180, %177, %181 : vector<8x512xi1>, vector<8x512xf32>
    %183 = tpu.concatenate %144, %149, %155, %160, %138, %165, %171, %176, %182, %41 in 0 : vector<8x512xf32>, vector<8x512xf32>, vector<8x512xf32>, vector<8x512xf32>, vector<8x512xf32>, vector<8x512xf32>, vector<8x512xf32>, vector<8x512xf32>, vector<8x512xf32>, vector<1x512xf32> -> vector<73x512xf32>
    %c0_61 = arith.constant 0 : index
    %c0_62 = arith.constant 0 : index
    %184 = vector.load %arg3[%c0_61, %c0_62] : memref<8x73xf32, #tpu.memory_space<vmem>>, vector<8x73xf32>
    %cst_63 = arith.constant dense<0.000000e+00> : vector<8x512xf32>
    %185 = tpu.matmul %184, %183, %cst_63 {dimension_numbers = #tpu.dot_dimension_numbers<[1], [0], [0], [1], [0, 0, 1, 1], [], []>} : vector<8x73xf32>, vector<73x512xf32>, vector<8x512xf32> -> vector<8x512xf32>
    %186 = arith.addf %185, %91 : vector<8x512xf32>
    %c17_i32_64 = arith.constant 17 : i32
    %187 = tpu.dynamic_rotate %186 by %c17_i32_64 dim 1 : vector<8x512xf32>, i32 -> vector<8x512xf32>
    %188 = arith.andi %38, %34 : vector<1x512xi1>
    %cst_65 = arith.constant 0.000000e+00 : f32
    %189 = vector.shape_cast %188 : vector<1x512xi1> to vector<1x512xi1>
    %190 = vector.broadcast %189 : vector<1x512xi1> to vector<8x512xi1>
    %191 = vector.broadcast %cst_65 : f32 to vector<8x512xf32>
    %192 = arith.select %190, %187, %191 : vector<8x512xi1>, vector<8x512xf32>
    %c16_i32_66 = arith.constant 16 : i32
    %193 = tpu.dynamic_rotate %186 by %c16_i32_66 dim 1 : vector<8x512xf32>, i32 -> vector<8x512xf32>
    %cst_67 = arith.constant 0.000000e+00 : f32
    %194 = vector.shape_cast %38 : vector<1x512xi1> to vector<1x512xi1>
    %195 = vector.broadcast %194 : vector<1x512xi1> to vector<8x512xi1>
    %196 = vector.broadcast %cst_67 : f32 to vector<8x512xf32>
    %197 = arith.select %195, %193, %196 : vector<8x512xi1>, vector<8x512xf32>
    %c15_i32_68 = arith.constant 15 : i32
    %198 = tpu.dynamic_rotate %186 by %c15_i32_68 dim 1 : vector<8x512xf32>, i32 -> vector<8x512xf32>
    %199 = arith.andi %38, %36 : vector<1x512xi1>
    %cst_69 = arith.constant 0.000000e+00 : f32
    %200 = vector.shape_cast %199 : vector<1x512xi1> to vector<1x512xi1>
    %201 = vector.broadcast %200 : vector<1x512xi1> to vector<8x512xi1>
    %202 = vector.broadcast %cst_69 : f32 to vector<8x512xf32>
    %203 = arith.select %201, %198, %202 : vector<8x512xi1>, vector<8x512xf32>
    %c1_i32_70 = arith.constant 1 : i32
    %204 = tpu.dynamic_rotate %186 by %c1_i32_70 dim 1 : vector<8x512xf32>, i32 -> vector<8x512xf32>
    %cst_71 = arith.constant 0.000000e+00 : f32
    %205 = vector.shape_cast %34 : vector<1x512xi1> to vector<1x512xi1>
    %206 = vector.broadcast %205 : vector<1x512xi1> to vector<8x512xi1>
    %207 = vector.broadcast %cst_71 : f32 to vector<8x512xf32>
    %208 = arith.select %206, %204, %207 : vector<8x512xi1>, vector<8x512xf32>
    %c511_i32_72 = arith.constant 511 : i32
    %209 = tpu.dynamic_rotate %186 by %c511_i32_72 dim 1 : vector<8x512xf32>, i32 -> vector<8x512xf32>
    %cst_73 = arith.constant 0.000000e+00 : f32
    %210 = vector.shape_cast %36 : vector<1x512xi1> to vector<1x512xi1>
    %211 = vector.broadcast %210 : vector<1x512xi1> to vector<8x512xi1>
    %212 = vector.broadcast %cst_73 : f32 to vector<8x512xf32>
    %213 = arith.select %211, %209, %212 : vector<8x512xi1>, vector<8x512xf32>
    %c497_i32_74 = arith.constant 497 : i32
    %214 = tpu.dynamic_rotate %186 by %c497_i32_74 dim 1 : vector<8x512xf32>, i32 -> vector<8x512xf32>
    %215 = arith.andi %40, %34 : vector<1x512xi1>
    %cst_75 = arith.constant 0.000000e+00 : f32
    %216 = vector.shape_cast %215 : vector<1x512xi1> to vector<1x512xi1>
    %217 = vector.broadcast %216 : vector<1x512xi1> to vector<8x512xi1>
    %218 = vector.broadcast %cst_75 : f32 to vector<8x512xf32>
    %219 = arith.select %217, %214, %218 : vector<8x512xi1>, vector<8x512xf32>
    %c496_i32_76 = arith.constant 496 : i32
    %220 = tpu.dynamic_rotate %186 by %c496_i32_76 dim 1 : vector<8x512xf32>, i32 -> vector<8x512xf32>
    %cst_77 = arith.constant 0.000000e+00 : f32
    %221 = vector.shape_cast %40 : vector<1x512xi1> to vector<1x512xi1>
    %222 = vector.broadcast %221 : vector<1x512xi1> to vector<8x512xi1>
    %223 = vector.broadcast %cst_77 : f32 to vector<8x512xf32>
    %224 = arith.select %222, %220, %223 : vector<8x512xi1>, vector<8x512xf32>
    %c495_i32_78 = arith.constant 495 : i32
    %225 = tpu.dynamic_rotate %186 by %c495_i32_78 dim 1 : vector<8x512xf32>, i32 -> vector<8x512xf32>
    %226 = arith.andi %40, %36 : vector<1x512xi1>
    %cst_79 = arith.constant 0.000000e+00 : f32
    %227 = vector.shape_cast %226 : vector<1x512xi1> to vector<1x512xi1>
    %228 = vector.broadcast %227 : vector<1x512xi1> to vector<8x512xi1>
    %229 = vector.broadcast %cst_79 : f32 to vector<8x512xf32>
    %230 = arith.select %228, %225, %229 : vector<8x512xi1>, vector<8x512xf32>
    %231 = tpu.concatenate %192, %197, %203, %208, %186, %213, %219, %224, %230, %41 in 0 : vector<8x512xf32>, vector<8x512xf32>, vector<8x512xf32>, vector<8x512xf32>, vector<8x512xf32>, vector<8x512xf32>, vector<8x512xf32>, vector<8x512xf32>, vector<8x512xf32>, vector<1x512xf32> -> vector<73x512xf32>
    %c0_80 = arith.constant 0 : index
    %c0_81 = arith.constant 0 : index
    %232 = vector.load %arg3[%c0_80, %c0_81] : memref<8x73xf32, #tpu.memory_space<vmem>>, vector<8x73xf32>
    %cst_82 = arith.constant dense<0.000000e+00> : vector<8x512xf32>
    %233 = tpu.matmul %232, %231, %cst_82 {dimension_numbers = #tpu.dot_dimension_numbers<[1], [0], [0], [1], [0, 0, 1, 1], [], []>} : vector<8x73xf32>, vector<73x512xf32>, vector<8x512xf32> -> vector<8x512xf32>
    %234 = arith.addf %233, %91 : vector<8x512xf32>
    %c0_83 = arith.constant 0 : index
    %c0_84 = arith.constant 0 : index
    %235 = vector.load %arg4[%c0_83, %c0_84] : memref<8x512xf32, #tpu.memory_space<vmem>>, vector<8x512xf32>
    tpu.vector_store %arg4[%c0_83, %c0_84], %234 {strides = array<i32>} : memref<8x512xf32, #tpu.memory_space<vmem>>, vector<8x512xf32>,
    return
  }
  func.func @transform_0(%arg0: i32) -> (i32, i32) {
    %c0_i32 = arith.constant 0 : i32
    %c0_i32_0 = arith.constant 0 : i32
    return %c0_i32, %arg0 : i32, i32
  }
  func.func @transform_1(%arg0: i32) -> (i32, i32) {
    %c0_i32 = arith.constant 0 : i32
    %c0_i32_0 = arith.constant 0 : i32
    %c0_i32_1 = arith.constant 0 : i32
    return %c0_i32, %c0_i32_0 : i32, i32
  }
  func.func @transform_2(%arg0: i32) -> (i32, i32) {
    %c0_i32 = arith.constant 0 : i32
    %c0_i32_0 = arith.constant 0 : i32
    %c0_i32_1 = arith.constant 0 : i32
    return %c0_i32, %c0_i32_0 : i32, i32
  }
  func.func @transform_3(%arg0: i32) -> (i32, i32) {
    %c0_i32 = arith.constant 0 : i32
    %c0_i32_0 = arith.constant 0 : i32
    return %c0_i32, %arg0 : i32, i32
  }
}

</mosaic_0001>

<bundles_post_ra>
// kernel: tpu_custom_call.1
= control target key start
LH: loop header
LB: loop body
LE: loop exit
PB: predicated region body
PF: predicated region fallthrough
CT: control target
= control target key end

     0   :  { %8 = vsyncpa [#allocation3], 0  ;;  %s2971_s0 = inlined_call_operand.hbm [shape: f32[4,1024], index: 0, kind: input, shape index: {}]   ;;  %s2972_s1 = inlined_call_operand.hbm [shape: f32[8,73], index: 1, kind: input, shape index: {}]   ;;  %s2973_s2 = inlined_call_operand.hbm [shape: f32[8,73], index: 2, kind: input, shape index: {}]   ;;  %s2974_s3 = inlined_call_operand.hbm [shape: f32[8,1024], index: 3, kind: output, shape index: {}]  }
   0x1   :  { %10 = vsyncpa [#allocation3 + $0x1], 0 }
   0x2   :  { %11 = vsyncpa [#allocation6], 0 }
   0x3   :  { %12 = vsyncpa [#allocation4], 0 }
   0x4   :  { %14 = vsyncpa [#allocation4 + $0x1], 0  ;;  %s1837_s12 = smov 0   ;;  %s1839_s13 = smov 0  }
   0x5   :  { %s1841_s14 = smov 0   ;;  %s1843_s15 = smov 0  }
   0x6 LB: > { %s1858_s16 = sadd.s32 4294967295, %s1804_s15   ;;  %s1400_s17 = sadd.s32 4294967294, %s1804_s15   ;;  %s1804_s15 = sphi %s1843_s15, %s3223_s15   ;;  %s1800_s14 = sphi %s1841_s14, %s3222_s14   ;;  %s1796_s13 = sphi %s1839_s13, %s3221_s13   ;;  %s1792_s12 = sphi %s1837_s12, %s3220_s12  }
   0x7   : > { %p40_p0 = scmp.ne.s32.totalorder %s1796_s13, %s1792_s12  ;;  %p41_p1 = scmp.eq.s32.totalorder %s1858_s16, 0 }
   0x8   : > { %p106_p2 = scmp.eq.s32.totalorder %s1858_s16, 1  ;;  %p112_p3 = scmp.eq.s32.totalorder %s1400_s17, 1 }
   0x9   : > { %p1867_p4 = por %p41_p1, %p40_p0  ;;  %p1401_p5 = scmp.ge.s32.totalorder %s1804_s15, 1 }
   0xa   : > { %p1872_p6 = por %p112_p3, %p40_p0  ;;  %p119_p7 = scmp.lt.s32.totalorder %s1804_s15, 3 }
   0xb   : > { %s131_s22 = sshll.u32 %s2972_s1, 4  ;;  %s1806_s24 = smov [#allocation5]   ;;  %s132_s22 = int_to_ptr.hbm [resolvable:$true] %s131_s22 }
   0xc   : > { %p1880_p8 = pnand %p1401_p5, %p119_p7  ;;  %s133_s25 = sshll.u32 %s1806_s24, 4  ;;  %s134_s25 = int_to_ptr.vmem [resolvable:$true] %s133_s25 }
   0xd   : > { %s143_s28 = sshll.u32 %s2973_s2, 4  ;;  %s1807_s29 = smov [#allocation7]   ;;  %s144_s28 = int_to_ptr.hbm [resolvable:$true] %s143_s28 }
   0xe   : > { %p1580_p10 = pneg %p1880_p8  ;;  %s145_s30 = sshll.u32 %s1807_s29, 4  ;;  %s146_s30 = int_to_ptr.vmem [resolvable:$true] %s145_s30 }
   0xf   : > { %s1893_s4 = sadd.s32 1, %s1804_s15   ;;  %s27_s5 = sadd.s32 1, %s1800_s14 }
  0x10   : > { %p1581_p11 = pnand %p1580_p10, %p41_p1  ;;  %s24_s6 = ssub.s32 %s1804_s15, %s1893_s4 }
  0x11   : > { %p34_p12 = scmp.ne.s32.totalorder %s1800_s14, %s1796_s13  ;;  %p25_p13 = scmp.eq.s32.totalorder %s24_s6, 0 }
  0x12   : > { %1583 = dma.hbm_to_vmem [thread:$0]  (!%p1581_p11), %s132_s22, 128, %s134_s25, [#allocation6]  }
  0x13   : > { %1586 = dma.hbm_to_vmem [thread:$0]  (!%p1581_p11), %s144_s28, 128, %s146_s30, [#allocation6]  }
  0x14   : > { %p35_p0 = scmp.eq.s32.totalorder %s1804_s15, 0  ;;  %p1903_p3 = por %p106_p2, %p34_p12 }
  0x15   : > { %p1597_p5 = scmp.lt.s32.totalorder %s1804_s15, 2  ;;  %s156_s9 = sand.u32 1, %s1800_s14  }
  0x16   : > { %s1909_s8 = scalar_select %p25_p13, %s1800_s14, %s27_s5  }
  0x17   : > { %p36_p7 = por %p35_p0, %p34_p12  ;;  %s1405_s10 = sshll.u32 %s156_s9, 4 }
  0x18   : > { %s1566_s11 = sshll.u32 %s1804_s15, 4  ;;  %s160_s22 = scalar_lea.vmem [#allocation2], %s1405_s10 }
  0x19   : > { %s165_s21 = scalar_lea.hbm %s2971_s0, %s1566_s11  ;;  %s169_s24 = sshll.u32 %s160_s22, 4  ;;  %s170_s24 = int_to_ptr.vmem [resolvable:$true] %s169_s24 }
  0x1a   : > { %s167_s25 = sshll.u32 %s165_s21, 4  ;;  %p1916_p2 = pnand %p1597_p5, %p36_p7  ;;  %s168_s25 = int_to_ptr.hbm [resolvable:$true] %s167_s25 }
  0x1b   : > { %s157_s27 = scalar_lea.sflag [#allocation3], %s156_s9  ;;  %s1704_s28 = sshra.s32 %s168_s25, 4  ;;  %s1705_s28 = int_to_ptr.hbm [resolvable:$true] %s1704_s28 }
  0x1c   : > { %s1706_s29 = scalar_lea.hbm %s1705_s28, 16  ;;  %p1708_p11 = pneg %p1916_p2 }
  0x1d   : > { %p1707_p10 = scmp.ne.s32.totalorder %s1705_s28, %s1706_s29  ;;  %s1711_s6 = scalar_lea.hbm %s2971_s0, 32 }
  0x1e   : > { %p1712_p0 = scmp.lt.s32.totalorder %s1705_s28, %s2971_s0  ;;  %p1713_p5 = scmp.lt.s32.totalorder %s1711_s6, %s1706_s29 }
  0x1f   : > { %p1709_p12 = pnand %p1708_p11, %p1707_p10 }
  0x20   : > { %p1714_p7 = por %p1713_p5, %p1712_p0 }
  0x21   : > { %p1710_p13 = pneg %p1709_p12 }
  0x23   : > { %p1715_p9 = pnand %p1714_p7, %p1710_p13 }
  0x25   : > { %1718 = shalt.err (!%p1715_p9)
}
  0x26   : > { %1590 = dma.hbm_to_vmem [thread:$0]  (!%p1916_p2), %s168_s25, 256, %s170_s24, %s157_s27  }
  0x27   : > { %178 = sbr.rel (%p1880_p8) target bundleno = 1365 (0x555), region = 32  ;;  %s1933_s9 = sand.u32 (!%p1880_p8), 1, %s1796_s13  }
  0x28   : > { %s1409_s17 = sshll.u32 (!%p1880_p8), %s1933_s9, 4  ;;  %s181_s20 = scalar_lea.sflag (!%p1880_p8), [#allocation3], %s1933_s9 }
  0x29   : > { %s184_s21 = scalar_lea.vmem (!%p1880_p8), [#allocation2], %s1409_s17 }
  0x2c   : > { %1779 = dma.done.wait (%p1867_p4), %s181_s20, 256  }
  0x2d   : > { %1781 = vsyncadd (%p1867_p4), %s181_s20, 4294967040 }
  0x2e   : > { %1783 = dma.done.wait (%p41_p1), [#allocation6], 256  }
  0x2f   : > { %1785 = vsyncadd (%p41_p1), [#allocation6], 4294967040  ;;  %v338_v0 = vld [vmem:[%s184_s21 + $0x8] sm:$0xff]  ;;  %v337_v1 = vld [vmem:[%s184_s21] sm:$0xff]  ;;  %vm2977_vm0 = vcmask 1043456   ;;  %s1808_s18 = smov 111   ;;  %v220_v11 = vlaneseq }
  0x30   : > { %343 = vst [vmem:[#allocation1 + $0x10] ss:$2 sm:$0xff] %v338_v0  ;;  %s1809_s23 = smov 112   ;;  %s1810_s22 = smov 113   ;;  %vm2975_vm1 = vcmask 1040384   ;;  %v1816_v10 = vmov 1.0  }
  0x31   : > { %341 = vst [vmem:[#allocation1] ss:$2 sm:$0xff] %v337_v1  ;;  %s1811_s24 = smov 127   ;;  %s1812_s25 = smov 1   ;;  %1443 = vmatpush.msk.msra.mxu3 %vm2975_vm1, %v1816_v10  ;;  %1433 = vmatpush.msk.msra.mxu2 %vm2975_vm1, %v1816_v10  ;;  %v2001_v12 = vand.u32 127, %v220_v11  ;;  %v3017_v1 = vmov 0 }
  0x32   : > { %s1813_s26 = smov 15   ;;  %s1814_s27 = smov 16   ;;  %1413 = vmatpush.msk.msra.mxu0 %vm2975_vm1, %v1816_v10  ;;  %1423 = vmatpush.msk.msra.mxu1 %vm2975_vm1, %v1816_v10 }
  0x33   : > { %s1815_s28 = smov 17   ;;  %v224_v14 = vadd.s32 384, %v2001_v12  ;;  %v2009_v18 = vadd.s32 256, %v2001_v12  ;;  %vm2978_vm4 = vcmp.lt.s32.totalorder %v2001_v12, 111  ;;  %vm2979_vm7 = vcmp.lt.s32.totalorder %v2001_v12, 112  ;;  %s1412_s29 = sshll.u32 %s1933_s9, 5 }
  0x34   : > { %vm2980_vm9 = vcmp.lt.s32.totalorder %v2001_v12, 113  ;;  %v222_v37 = vadd.s32 128, %v2001_v12  ;;  %vm2976_vm12 = vcmp.lt.s32.totalorder %v2001_v12, 127  ;;  %v229_v42 = vand.u32 255, %v2001_v12  ;;  %s1567_s30 = sshll.u32 %s1858_s16, 5  ;;  %s217_s5 = scalar_lea.vmem [#allocation8], %s1412_s29 }
  0x35   : > { %v250_v15 = vand.u32 255, %v224_v14  ;;  %v243_v22 = vand.u32 255, %v2009_v18  ;;  %s1306_s11 = scalar_lea.hbm %s2974_s3, %s1567_s30  ;;  %s1308_s17 = sshll.u32 %s217_s5, 4  ;;  %s1309_s17 = int_to_ptr.vmem [resolvable:$true] %s1308_s17 }
  0x36   : > { %v236_v39 = vand.u32 255, %v222_v37  ;;  %v2083_v47 = vand.u32 15, %v229_v42  ;;  %s1310_s20 = sshll.u32 %s1306_s11, 4  ;;  %s1295_s16 = scalar_lea.sflag [#allocation4], %s1933_s9  ;;  %s1311_s20 = int_to_ptr.hbm [resolvable:$true] %s1310_s20 }
  0x37   : > { %v1945_v2 = vld.sshfl [vmem:[#allocation1 + $0x18] sm:$0xff pattern:$0x75316420]  ;;  %v1947_v3 = vld.sshfl [vmem:[#allocation1 + $0x10] sm:$0xff pattern:$0x75316420] }
  0x38   : > { %v356_v4 = vsel %vm2977_vm0, %v1945_v2, 0.0  ;;  %v355_v5 = vsel %vm2977_vm0, %v1947_v3, 0.0  ;;  %v1953_v6 = vld.sshfl [vmem:[#allocation1] sm:$0xff pattern:$0x75316420]  ;;  %v2006_v17 = vand.u32 15, %v250_v15 }
  0x39   : > { %550 = vrot.lane.b32.xlu1 %v356_v4, %s1808_s18  ;;  %523 = vrot.lane.b32.xlu2 %v355_v5, %s1809_s23  ;;  %v353_v7 = vsel %vm2977_vm0, %v1953_v6, 0.0  ;;  %v1969_v8 = vld.sshfl [vmem:[#allocation1 + $0x8] sm:$0xff pattern:$0x75316420]  ;;  %vm2012_vm3 = vcmp.lt.s32.totalorder %v250_v15, 240  ;;  %v2032_v26 = vand.u32 15, %v243_v22 }
  0x3a   : > { %544 = vrot.lane.b32.xlu0 %v353_v7, %s1808_s18  ;;  %v354_v9 = vsel %vm2977_vm0, %v1969_v8, 0.0  ;;  %vm2986_vm2 = vcmp.ne.s32.totalorder %v2006_v17, 15  ;;  %vm2983_vm8 = vcmp.ne.s32.totalorder %v2006_v17, 0  ;;  %v2073_v45 = vand.u32 15, %v236_v39  ;;  %s1748_s21 = sshra.s32 %s1311_s20, 4  ;;  %s1749_s21 = int_to_ptr.hbm [resolvable:$true] %s1748_s21 }
  0x3b   : > { %vm2021_vm5 = vmand %vm2012_vm3, %vm2986_vm2  ;;  %vm2984_vm6 = vcmp.ne.s32.totalorder %v2032_v26, 15  ;;  %vm2988_vm10 = vcmp.ne.s32.totalorder %v2032_v26, 0  ;;  %vm2088_vm14 = vcmp.lt.s32.totalorder %v236_v39, 240  ;;  %vm2995_vm15 = vcmp.ne.s32.totalorder %v2083_v47, 15  ;;  %p1755_p9 = scmp.lt.s32.totalorder %s1749_s21, %s2974_s3 }
  0x3c   : > { %vm2054_vm11 = vmand %vm2012_vm3, %vm2983_vm8  ;;  %vm2990_vm13 = vcmp.ne.s32.totalorder %v2073_v45, 15 }
  0x3d   : > { %vm2099_vm1 = vmand %vm2088_vm14, %vm2990_vm13 }
  0x41   : > { %525 = vrot.lane.b32.xlu2 %v356_v4, %s1809_s23  ;;  %519 = vrot.lane.b32.xlu1 %v353_v7, %s1809_s23 }
  0x42   : > { %548 = vrot.lane.b32.xlu0 %v355_v5, %s1808_s18 }
  0x49   : > { %496 = vrot.lane.b32.xlu2 %v356_v4, %s1810_s22  ;;  %494 = vrot.lane.b32.xlu1 %v355_v5, %s1810_s22 }
  0x4a   : > { %490 = vrot.lane.b32.xlu0 %v353_v7, %s1810_s22 }
  0x51   : > { %471 = vrot.lane.b32.xlu2 %v356_v4, %s1811_s24  ;;  %469 = vrot.lane.b32.xlu1 %v355_v5, %s1811_s24 }
  0x52   : > { %465 = vrot.lane.b32.xlu0 %v353_v7, %s1811_s24 }
  0x59   : > { %442 = vrot.lane.b32.xlu2 %v354_v9, %s1812_s25  ;;  %521 = vrot.lane.b32.xlu1 %v354_v9, %s1809_s23 }
  0x5a   : > { %546 = vrot.lane.b32.xlu0 %v354_v9, %s1808_s18 }
  0x61   : > { %492 = vrot.lane.b32.xlu2 %v354_v9, %s1810_s22  ;;  %446 = vrot.lane.b32.xlu1 %v356_v4, %s1812_s25 }
  0x62   : > { %444 = vrot.lane.b32.xlu0 %v355_v5, %s1812_s25 }
  0x69   : > { %417 = vrot.lane.b32.xlu2 %v356_v4, %s1813_s26  ;;  %415 = vrot.lane.b32.xlu1 %v355_v5, %s1813_s26 }
  0x6a   : > { %413 = vrot.lane.b32.xlu0 %v354_v9, %s1813_s26 }
  0x71   : > { %390 = vrot.lane.b32.xlu2 %v355_v5, %s1814_s27  ;;  %388 = vrot.lane.b32.xlu1 %v354_v9, %s1814_s27 }
  0x72   : > { %467 = vrot.lane.b32.xlu0 %v354_v9, %s1811_s24 }
  0x79   : > { %361 = vrot.lane.b32.xlu2 %v355_v5, %s1815_s28  ;;  %359 = vrot.lane.b32.xlu1 %v354_v9, %s1815_s28 }
  0x7a   : > { %392 = vrot.lane.b32.xlu0 %v356_v4, %s1814_s27 }
  0x81   : > { %411 = vrot.lane.b32.xlu2 %v353_v7, %s1813_s26  ;;  %440 = vrot.lane.b32.xlu1 %v353_v7, %s1812_s25 }
  0x82   : > { %363 = vrot.lane.b32.xlu0 %v356_v4, %s1815_s28 }
  0x89   : > { %357 = vrot.lane.b32.xlu1 %v353_v7, %s1815_s28 }
  0x8a   : > { %386 = vrot.lane.b32.xlu0 %v353_v7, %s1814_s27 }
  0x93   : > { %v2003_v13 = vpop.permute.xlu2 %523 }
  0x9b   : > { %v526_v16 = vpop.permute.xlu2 %525 }
  0x9c   : > { %v528_v32 = vsel %vm2979_vm7, %v2003_v13, %v526_v16 }
  0xa3   : > { %v497_v24 = vpop.permute.xlu2 %496 }
  0xab   : > { %v551_v20 = vpop.permute.xlu1 %550  ;;  %v472_v31 = vpop.permute.xlu2 %471 }
  0xac   : > { %v545_v23 = vpop.permute.xlu0 %544 }
  0xad   : > { %v556_v25 = vsel %vm2978_vm4, %v551_v20, %v545_v23 }
  0xae   : > { %1444 = vmatpush.msk.msra.mxu3 %vm2021_vm5, %v556_v25  ;;  %v3028_v25 = vmov 0 }
  0xb3   : > { %v520_v27 = vpop.permute.xlu1 %519  ;;  %v2067_v40 = vpop.permute.xlu2 %442 }
  0xb4   : > { %v549_v28 = vpop.permute.xlu0 %548  ;;  %v531_v29 = vsel %vm2979_vm7, %v526_v16, %v520_v27 }
  0xb5   : > { %v553_v30 = vsel %vm2978_vm4, %v549_v28, %v551_v20  ;;  %1445 = vmatpush.msk.msra.mxu3 %vm2012_vm3, %v531_v29  ;;  %v3025_v20 = vmov 0 }
  0xb6   : > { %1434 = vmatpush.msk.msra.mxu2 %vm2984_vm6, %v553_v30 }
  0xb8   : > { %630 = vmatpush.msra.mxu2 %v528_v32 }
  0xbb   : > { %v495_v33 = vpop.permute.xlu1 %494  ;;  %v493_v49 = vpop.permute.xlu2 %492 }
  0xbc   : > { %v491_v35 = vpop.permute.xlu0 %490  ;;  %v499_v36 = vsel %vm2980_vm9, %v495_v33, %v497_v24  ;;  %v500_v59 = vsel %vm2980_vm9, %v493_v49, %v495_v33 }
  0xbd   : > { %v502_v38 = vsel %vm2980_vm9, %v497_v24, %v491_v35  ;;  %1435 = vmatpush.msk.msra.mxu2 %vm2988_vm10, %v499_v36  ;;  %v501_v58 = vsel %vm2980_vm9, %v491_v35, %v493_v49  ;;  %vm2148_vm9 = vcmp.ge.s32.totalorder %v243_v22, 16 }
  0xbe   : > { %1446 = vmatpush.msk.msra.mxu3 %vm2054_vm11, %v502_v38  ;;  %v3018_v1 = vsel %vm2148_vm9, 4294967295, %v3017_v1 }
  0xc3   : > { %v470_v41 = vpop.permute.xlu1 %469  ;;  %v418_v62 = vpop.permute.xlu2 %417 }
  0xc4   : > { %v466_v43 = vpop.permute.xlu0 %465  ;;  %v474_v44 = vsel %vm2976_vm12, %v470_v41, %v472_v31 }
  0xc5   : > { %v477_v46 = vsel %vm2976_vm12, %v472_v31, %v466_v43  ;;  %1436 = vmatpush.msk.msra.mxu2 %vm2984_vm6, %v474_v44  ;;  %vm2981_vm12 = vcmp.ne.s32.totalorder %v2073_v45, 0 }
  0xc6   : > { %1447 = vmatpush.msk.msra.mxu3 %vm2986_vm2, %v477_v46 }
  0xc7   : > { %1437 = vmatpush.msk.msra.mxu2 %vm2977_vm0, %v1947_v3 }
  0xc8   : > { %1448 = vmatpush.msk.msra.mxu3 %vm2977_vm0, %v1945_v2  ;;  %vm2982_vm0 = vcmp.ne.s32.totalorder %v2083_v47, 0 }
  0xcb   : > { %v522_v50 = vpop.permute.xlu1 %521  ;;  %v391_v9 = vpop.permute.xlu2 %390 }
  0xcc   : > { %v547_v52 = vpop.permute.xlu0 %546  ;;  %v530_v55 = vsel %vm2979_vm7, %v520_v27, %v522_v50  ;;  %v529_v56 = vsel %vm2979_vm7, %v522_v50, %v2003_v13  ;;  %vm2985_vm7 = vcmp.lt.s32.totalorder %v2001_v12, 1 }
  0xcd   : > { %v555_v53 = vsel %vm2978_vm4, %v545_v23, %v547_v52  ;;  %v554_v54 = vsel %vm2978_vm4, %v547_v52, %v549_v28  ;;  %vm2122_vm4 = vmand %vm2088_vm14, %vm2981_vm12  ;;  %vm2987_vm12 = vcmp.lt.s32.totalorder %v2001_v12, 15 }
  0xce   : > { %1414 = vmatpush.msk.msra.mxu0 %vm2995_vm15, %v555_v53  ;;  %1424 = vmatpush.msk.msra.mxu1 %vm2099_vm1, %v554_v54 }
  0xd0   : > { %590 = vmatpush.msra.mxu0 %v530_v55  ;;  %1425 = vmatpush.msk.msra.mxu1 %vm2088_vm14, %v529_v56 }
  0xd2   : > { %1415 = vmatpush.msk.msra.mxu0 %vm2982_vm0, %v501_v58  ;;  %1426 = vmatpush.msk.msra.mxu1 %vm2122_vm4, %v500_v59  ;;  %vm2157_vm0 = vmand %vm2148_vm9, %vm2984_vm6  ;;  %vm3021_vm6 = vcmp.lt.s32.totalorder %v2001_v12, 127 }
  0xd3   : > { %v447_v60 = vpop.permute.xlu1 %446  ;;  %v362_v18 = vpop.permute.xlu2 %361 }
  0xd4   : > { %v445_v61 = vpop.permute.xlu0 %444 }
  0xd5   : > { %v450_v63 = vsel %vm2985_vm7, %v2067_v40, %v445_v61  ;;  %v449_v0 = vsel %vm2985_vm7, %v445_v61, %v447_v60  ;;  %vm3022_vm7 = vmmov %vm3021_vm6 }
  0xd6   : > { %1438 = vmatpush.msk.msra.mxu2 %vm2988_vm10, %v450_v63  ;;  %1449 = vmatpush.msk.msra.mxu3 %vm2983_vm8, %v449_v0  ;;  %vm2989_vm8 = vcmp.lt.s32.totalorder %v2001_v12, 16 }
  0xdb   : > { %v416_v2 = vpop.permute.xlu1 %415  ;;  %v412_v27 = vpop.permute.xlu2 %411 }
  0xdc   : > { %v414_v4 = vpop.permute.xlu0 %413  ;;  %v420_v5 = vsel %vm2987_vm12, %v416_v2, %v418_v62 }
  0xdd   : > { %v421_v7 = vsel %vm2987_vm12, %v414_v4, %v416_v2  ;;  %1450 = vmatpush.msk.msra.mxu3 %vm2986_vm2, %v420_v5  ;;  %vm3023_vm2 = vcmask 1043456  }
  0xde   : > { %1439 = vmatpush.msk.msra.mxu2 %vm2157_vm0, %v421_v7  ;;  %vm3024_vm12 = vmmov %vm3023_vm2 }
  0xe3   : > { %v389_v11 = vpop.permute.xlu1 %388 }
  0xe4   : > { %v468_v13 = vpop.permute.xlu0 %467  ;;  %v396_v14 = vsel %vm2989_vm8, %v389_v11, %v391_v9 }
  0xe5   : > { %v476_v15 = vsel %vm3021_vm6, %v466_v43, %v468_v13  ;;  %v475_v16 = vsel %vm3022_vm7, %v468_v13, %v470_v41  ;;  %1440 = vmatpush.msk.msra.mxu2 %vm2148_vm9, %v396_v14  ;;  %vm2992_vm6 = vcmp.lt.s32.totalorder %v2001_v12, 17  ;;  %vm2191_vm7 = vmand %vm2148_vm9, %vm2988_vm10  ;;  %vm2206_vm10 = vcmp.ge.s32.totalorder %v229_v42, 16 }
  0xe6   : > { %1416 = vmatpush.msk.msra.mxu0 %vm2995_vm15, %v476_v15  ;;  %1427 = vmatpush.msk.msra.mxu1 %vm2990_vm13, %v475_v16  ;;  %v3026_v20 = vsel %vm2191_vm7, 4294967295, %v3025_v20  ;;  %v3029_v25 = vsel %vm2206_vm10, 4294967295, %v3028_v25  ;;  %vm3041_vm9 = vcmask 596992  }
  0xe8   : > { %1417 = vmatpush.msk.msra.mxu0 %vm3023_vm2, %v1953_v6  ;;  %1428 = vmatpush.msk.msra.mxu1 %vm3024_vm12, %v1969_v8  ;;  %v573_v8 = vld [vmem:[#allocation5] sm:$0xff]  ;;  %vm2991_vm2 = vcmask 596992   ;;  %vm3027_vm12 = vcmask 1040384  }
  0xeb   : > { %v360_v22 = vpop.permute.xlu1 %359 }
  0xec   : > { %v393_v23 = vpop.permute.xlu0 %392  ;;  %v367_v24 = vsel %vm2992_vm6, %v360_v22, %v362_v18  ;;  %vm3035_vm6 = vcmp.ne.s32.totalorder %v2073_v45, 0 }
  0xed   : > { %v395_v6 = vsel %vm2989_vm8, %v391_v9, %v393_v23  ;;  %1441 = vmatpush.msk.msra.mxu2 %vm2191_vm7, %v367_v24  ;;  %vm3030_vm8 = vcmp.lt.s32.totalorder %v2001_v12, 1  ;;  %vm3037_vm7 = vcmp.ne.s32.totalorder %v2006_v17, 0 }
  0xee   : > { %656 = vmatpush.msra.mxu3 %v395_v6  ;;  %1442 = vmatmul.msk.f32.vlgmr.msra.gmra.mxu2 %vm2991_vm2, %v573_v8  ;;  %vm3031_vm13 = vmmov %vm3030_vm8  ;;  %vm3034_vm2 = vcmp.ne.s32.totalorder %v2083_v47, 0 }
  0xef   : > { %1471 = vmatpush.msk.msrb.mxu2 %vm3027_vm12, %v1816_v10  ;;  %vm2219_vm12 = vmand %vm2206_vm10, %vm2995_vm15 }
  0xf3   : > { %v441_v28 = vpop.permute.xlu1 %440 }
  0xf4   : > { %v364_v29 = vpop.permute.xlu0 %363  ;;  %v452_v30 = vsel %vm3030_vm8, %v447_v60, %v441_v28  ;;  %v451_v31 = vsel %vm3031_vm13, %v441_v28, %v2067_v40  ;;  %vm3036_vm8 = vcmp.lt.s32.totalorder %v2001_v12, 17  ;;  %vm3038_vm13 = vcmp.lt.s32.totalorder %v2001_v12, 15 }
  0xf5   : > { %1418 = vmatpush.msk.msra.mxu0 %vm3034_vm2, %v452_v30  ;;  %1429 = vmatpush.msk.msra.mxu1 %vm3035_vm6, %v451_v31  ;;  %v366_v33 = vsel %vm3036_vm8, %v362_v18, %v364_v29  ;;  %v423_v35 = vsel %vm3038_vm13, %v418_v62, %v412_v27  ;;  %vm3039_vm15 = vmmov %vm3038_vm13  ;;  %vm3040_vm2 = vcmp.ne.s32.totalorder %v2073_v45, 15  ;;  %vm3042_vm6 = vcmask 1040384  }
  0xf6   : > { %1451 = vmatpush.msk.msra.mxu3 %vm3037_vm7, %v366_v33  ;;  %v422_v36 = vsel %vm3039_vm15, %v412_v27, %v414_v4  ;;  %vm3043_vm7 = vcmp.lt.s32.totalorder %v2001_v12, 16  ;;  %vm3045_vm15 = vcmp.ne.s32.totalorder %v2083_v47, 0 }
  0xf7   : > { %1419 = vmatpush.msk.msra.mxu0 %vm2219_vm12, %v423_v35  ;;  %1430 = vmatpush.msk.msra.mxu1 %vm3040_vm2, %v422_v36  ;;  %vm3044_vm8 = vmmov %vm3043_vm7 }
  0xf8   : > { %1452 = vmatmul.msk.f32.vlgmr.msra.gmra.mxu3 %vm3041_vm9, %v573_v8  ;;  %vm2250_vm13 = vmand %vm2206_vm10, %vm3045_vm15  ;;  %vm3048_vm9 = vcmp.lt.s32.totalorder %v2001_v12, 17  ;;  %vm3053_vm15 = vcmask 1040384  }
  0xf9   : > { %1480 = vmatpush.msk.msrb.mxu3 %vm3042_vm6, %v1816_v10  ;;  %vm3049_vm2 = vmmov %vm3048_vm9  ;;  %vm3050_vm6 = vcmp.ne.s32.totalorder %v2073_v45, 0 }
  0xfb   : > { %v358_v37 = vpop.permute.xlu1 %357 }
  0xfc   : > { %v387_v38 = vpop.permute.xlu0 %386  ;;  %v369_v42 = vsel %vm3048_vm9, %v364_v29, %v358_v37  ;;  %v368_v43 = vsel %vm3049_vm2, %v358_v37, %v360_v22  ;;  %vm3056_vm9 = vcmp.ne.s32.totalorder %v2083_v47, 15  ;;  %vm3057_vm2 = vcmp.lt.s32.totalorder %v2001_v12, 112 }
  0xfd   : > { %v398_v39 = vsel %vm3043_vm7, %v393_v23, %v387_v38  ;;  %v397_v40 = vsel %vm3044_vm8, %v387_v38, %v389_v11  ;;  %vm3051_vm7 = vcmask 596992  }
  0xfe   : > { %1420 = vmatpush.msk.msra.mxu0 %vm2206_vm10, %v398_v39  ;;  %616 = vmatpush.msra.mxu1 %v397_v40  ;;  %vm3052_vm8 = vmmov %vm3051_vm7 }
  0xff   : > { %vm3054_vm10 = vmmov %vm3053_vm15 }
 0x100   : > { %1421 = vmatpush.msk.msra.mxu0 %vm2250_vm13, %v369_v42  ;;  %1431 = vmatpush.msk.msra.mxu1 %vm3050_vm6, %v368_v43  ;;  %vm3058_vm6 = vcmp.lt.s32.totalorder %v2001_v12, 113 }
 0x101   : > { %1422 = vmatmul.msk.f32.vlgmr.msra.gmra.mxu0 %vm3051_vm7, %v573_v8  ;;  %1432 = vmatmul.msk.f32.vlgmr.msra.gmra.mxu1 %vm3052_vm8, %v573_v8  ;;  %vm3059_vm7 = vcmp.ne.s32.totalorder %v2083_v47, 0 }
 0x102   : > { %1453 = vmatpush.msk.msrb.mxu0 %vm3053_vm15, %v1816_v10  ;;  %1462 = vmatpush.msk.msrb.mxu1 %vm3054_vm10, %v1816_v10  ;;  %vm3055_vm10 = vcmp.lt.s32.totalorder %v2001_v12, 111  ;;  %vm3061_vm15 = vcmp.lt.s32.totalorder %v2001_v12, 127 }
 0x103   : > { %vm3060_vm8 = vmmov %vm3055_vm10 }
 0x171   : > { %v2294_v50 = vpop.f32.mrf.mxu2 }
 0x17b   : > { %v2286_v49 = vpop.f32.mrf.mxu3 }
 0x17e   : > { %v2270_v44 = vpop.f32.mrf.mxu0  ;;  %v2272_v46 = vpop.f32.mrf.mxu1 }
 0x17f   : > { %774 = vrot.lane.b32.xlu2 %v2270_v44, %s1808_s18  ;;  %712 = vrot.lane.b32.xlu1 %v2272_v46, %s1812_s25 }
 0x180   : > { %760 = vrot.lane.b32.xlu0 %v2272_v46, %s1809_s23 }
 0x187   : > { %758 = vrot.lane.b32.xlu2 %v2270_v44, %s1809_s23  ;;  %744 = vrot.lane.b32.xlu1 %v2272_v46, %s1810_s22 }
 0x188   : > { %680 = vrot.lane.b32.xlu0 %v2272_v46, %s1814_s27 }
 0x18f   : > { %742 = vrot.lane.b32.xlu2 %v2270_v44, %s1810_s22  ;;  %780 = vrot.lane.b32.xlu1 %v2286_v49, %s1808_s18 }
 0x190   : > { %664 = vrot.lane.b32.xlu0 %v2272_v46, %s1815_s28 }
 0x197   : > { %726 = vrot.lane.b32.xlu2 %v2270_v44, %s1811_s24  ;;  %764 = vrot.lane.b32.xlu1 %v2286_v49, %s1809_s23 }
 0x198   : > { %778 = vrot.lane.b32.xlu0 %v2294_v50, %s1808_s18 }
 0x19f   : > { %748 = vrot.lane.b32.xlu1 %v2286_v49, %s1810_s22  ;;  %776 = vrot.lane.b32.xlu2 %v2272_v46, %s1808_s18 }
 0x1a0   : > { %762 = vrot.lane.b32.xlu0 %v2294_v50, %s1809_s23 }
 0x1a7   : > { %732 = vrot.lane.b32.xlu1 %v2286_v49, %s1811_s24  ;;  %696 = vrot.lane.b32.xlu2 %v2272_v46, %s1813_s26 }
 0x1a8   : > { %746 = vrot.lane.b32.xlu0 %v2294_v50, %s1810_s22 }
 0x1af   : > { %700 = vrot.lane.b32.xlu1 %v2286_v49, %s1813_s26  ;;  %728 = vrot.lane.b32.xlu2 %v2272_v46, %s1811_s24 }
 0x1b0   : > { %730 = vrot.lane.b32.xlu0 %v2294_v50, %s1811_s24 }
 0x1b7   : > { %682 = vrot.lane.b32.xlu1 %v2294_v50, %s1814_s27  ;;  %714 = vrot.lane.b32.xlu2 %v2294_v50, %s1812_s25 }
 0x1b8   : > { %716 = vrot.lane.b32.xlu0 %v2286_v49, %s1812_s25 }
 0x1bf   : > { %666 = vrot.lane.b32.xlu1 %v2294_v50, %s1815_s28  ;;  %684 = vrot.lane.b32.xlu2 %v2286_v49, %s1814_s27 }
 0x1c0   : > { %698 = vrot.lane.b32.xlu0 %v2294_v50, %s1813_s26 }
 0x1c7   : > { %694 = vrot.lane.b32.xlu1 %v2270_v44, %s1813_s26  ;;  %668 = vrot.lane.b32.xlu2 %v2286_v49, %s1815_s28 }
 0x1c8   : > { %710 = vrot.lane.b32.xlu0 %v2270_v44, %s1812_s25 }
 0x1cf   : > { %678 = vrot.lane.b32.xlu2 %v2270_v44, %s1814_s27 }
 0x1d0   : > { %662 = vrot.lane.b32.xlu0 %v2270_v44, %s1815_s28 }
 0x1d9   : > { %v775_v52 = vpop.permute.xlu2 %774 }
 0x1e1   : > { %v759_v53 = vpop.permute.xlu2 %758 }
 0x1e9   : > { %v743_v54 = vpop.permute.xlu2 %742 }
 0x1f1   : > { %v727_v55 = vpop.permute.xlu2 %726  ;;  %v2342_v56 = vpop.permute.xlu1 %712 }
 0x1f2   : > { %v761_v58 = vpop.permute.xlu0 %760 }
 0x1f3   : > { %v768_v63 = vsel %vm3057_vm2, %v759_v53, %v761_v58 }
 0x1f9   : > { %v745_v59 = vpop.permute.xlu1 %744  ;;  %v777_v60 = vpop.permute.xlu2 %776 }
 0x1fa   : > { %v2344_v61 = vpop.permute.xlu0 %680  ;;  %v784_v62 = vsel %vm3055_vm10, %v775_v52, %v777_v60  ;;  %v752_v0 = vsel %vm3058_vm6, %v743_v54, %v745_v59  ;;  %vm3062_vm10 = vmmov %vm3057_vm2 }
 0x1fb   : > { %1454 = vmatpush.msk.msrb.mxu0 %vm3056_vm9, %v784_v62  ;;  %vm3063_vm2 = vmmov %vm3060_vm8 }
 0x1fc   : > { %vm3064_vm6 = vmmov %vm3063_vm2 }
 0x1fd   : > { %802 = vmatpush.msrb.mxu0 %v768_v63 }
 0x1ff   : > { %1455 = vmatpush.msk.msrb.mxu0 %vm3059_vm7, %v752_v0  ;;  %vm3065_vm7 = vcmp.ne.s32.totalorder %v2032_v26, 15 }
 0x201   : > { %v781_v2 = vpop.permute.xlu1 %780  ;;  %v2356_v4 = vpop.permute.xlu2 %696 }
 0x202   : > { %v2358_v5 = vpop.permute.xlu0 %664  ;;  %v785_v7 = vsel %vm3060_vm8, %v781_v2, %v775_v52  ;;  %vm3066_vm8 = vcmp.lt.s32.totalorder %v2001_v12, 113 }
 0x203   : > { %1481 = vmatpush.msk.msrb.mxu3 %vm2021_vm5, %v785_v7 }
 0x209   : > { %v765_v9 = vpop.permute.xlu1 %764  ;;  %v729_v11 = vpop.permute.xlu2 %728 }
 0x20a   : > { %v779_v13 = vpop.permute.xlu0 %778  ;;  %v736_v14 = vsel %vm3061_vm15, %v727_v55, %v729_v11  ;;  %v769_v15 = vsel %vm3062_vm10, %v765_v9, %v759_v53  ;;  %vm3067_vm15 = vmmov %vm3062_vm10 }
 0x20b   : > { %1456 = vmatpush.msk.msrb.mxu0 %vm3056_vm9, %v736_v14  ;;  %v783_v16 = vsel %vm3063_vm2, %v777_v60, %v779_v13  ;;  %v782_v18 = vsel %vm3064_vm6, %v779_v13, %v781_v2  ;;  %1482 = vmatpush.msk.msrb.mxu3 %vm2012_vm3, %v769_v15  ;;  %vm3068_vm9 = vcmp.lt.s32.totalorder %v2001_v12, 127  ;;  %vm3069_vm2 = vmmov %vm3066_vm8  ;;  %v2448_v2 = vld [vmem:[#allocation7] sm:$0xff] }
 0x20c   : > { %1463 = vmatpush.msk.msrb.mxu1 %vm2099_vm1, %v783_v16  ;;  %1472 = vmatpush.msk.msrb.mxu2 %vm3065_vm7, %v782_v18  ;;  %vm3070_vm6 = vmmov %vm3069_vm2  ;;  %vm3071_vm7 = vcmp.ne.s32.totalorder %v2006_v17, 15 }
 0x20d   : > { %805 = vmatpush.msrb.mxu0 %v2270_v44 }
 0x211   : > { %v749_v22 = vpop.permute.xlu1 %748  ;;  %v715_v33 = vpop.permute.xlu2 %714 }
 0x212   : > { %v763_v23 = vpop.permute.xlu0 %762  ;;  %v753_v24 = vsel %vm3066_vm8, %v749_v22, %v743_v54  ;;  %vm3072_vm8 = vcmp.ne.s32.totalorder %v2032_v26, 0 }
 0x213   : > { %v767_v6 = vsel %vm3067_vm15, %v761_v58, %v763_v23  ;;  %v766_v8 = vsel %vm3062_vm10, %v763_v23, %v765_v9  ;;  %1483 = vmatpush.msk.msrb.mxu3 %vm2054_vm11, %v753_v24  ;;  %vm3073_vm15 = vmmov %vm3068_vm9 }
 0x214   : > { %1464 = vmatpush.msk.msrb.mxu1 %vm2088_vm14, %v767_v6  ;;  %842 = vmatpush.msrb.mxu2 %v766_v8  ;;  %vm3074_vm10 = vmmov %vm3068_vm9 }
 0x219   : > { %v733_v27 = vpop.permute.xlu1 %732  ;;  %v685_v40 = vpop.permute.xlu2 %684 }
 0x21a   : > { %v747_v28 = vpop.permute.xlu0 %746  ;;  %v737_v29 = vsel %vm3068_vm9, %v733_v27, %v727_v55  ;;  %vm3075_vm9 = vcmp.ne.s32.totalorder %v2073_v45, 15 }
 0x21b   : > { %v751_v30 = vsel %vm3069_vm2, %v745_v59, %v747_v28  ;;  %v750_v31 = vsel %vm3070_vm6, %v747_v28, %v749_v22  ;;  %1484 = vmatpush.msk.msrb.mxu3 %vm3071_vm7, %v737_v29  ;;  %vm3076_vm2 = vcmp.ne.s32.totalorder %v2032_v26, 15  ;;  %vm3077_vm6 = vcmp.lt.s32.totalorder %v2001_v12, 1  ;;  %vm3078_vm7 = vmmov %vm3072_vm8 }
 0x21c   : > { %1465 = vmatpush.msk.msrb.mxu1 %vm2122_vm4, %v751_v30  ;;  %1473 = vmatpush.msk.msrb.mxu2 %vm3072_vm8, %v750_v31  ;;  %v719_v39 = vsel %vm3077_vm6, %v2342_v56, %v715_v33  ;;  %vm3079_vm8 = vmmov %vm3077_vm6  ;;  %vm3084_vm6 = vcmp.lt.s32.totalorder %v2001_v12, 16 }
 0x21d   : > { %865 = vmatpush.msrb.mxu3 %v2286_v49 }
 0x221   : > { %v701_v35 = vpop.permute.xlu1 %700  ;;  %v669_v54 = vpop.permute.xlu2 %668 }
 0x222   : > { %v731_v36 = vpop.permute.xlu0 %730 }
 0x223   : > { %v735_v37 = vsel %vm3073_vm15, %v729_v11, %v731_v36  ;;  %v734_v38 = vsel %vm3074_vm10, %v731_v36, %v733_v27  ;;  %vm3080_vm15 = vcmp.ne.s32.totalorder %v2006_v17, 0  ;;  %vm3081_vm10 = vcmp.lt.s32.totalorder %v2001_v12, 15 }
 0x224   : > { %1466 = vmatpush.msk.msrb.mxu1 %vm3075_vm9, %v735_v37  ;;  %1474 = vmatpush.msk.msrb.mxu2 %vm3076_vm2, %v734_v38  ;;  %vm3082_vm9 = vmmov %vm3081_vm10  ;;  %vm3083_vm2 = vcmp.ne.s32.totalorder %v2006_v17, 15 }
 0x226   : > { %825 = vmatpush.msrb.mxu1 %v2272_v46  ;;  %845 = vmatpush.msrb.mxu2 %v2294_v50 }
 0x228   : > { %1475 = vmatpush.msk.msrb.mxu2 %vm3078_vm7, %v719_v39  ;;  %vm3085_vm7 = vmmov %vm3084_vm6 }
 0x229   : > { %v683_v42 = vpop.permute.xlu1 %682  ;;  %v679_v14 = vpop.permute.xlu2 %678 }
 0x22a   : > { %v717_v43 = vpop.permute.xlu0 %716  ;;  %v687_v60 = vsel %vm3084_vm6, %v2344_v61, %v683_v42  ;;  %v686_v62 = vsel %vm3085_vm7, %v683_v42, %v685_v40  ;;  %vm3091_vm6 = vcmask 596992  }
 0x22b   : > { %v718_v52 = vsel %vm3079_vm8, %v715_v33, %v717_v43  ;;  %vm3086_vm8 = vnez %v3018_v1  ;;  %vm3092_vm7 = vmmov %vm3091_vm6 }
 0x22c   : > { %1485 = vmatpush.msk.msrb.mxu3 %vm3080_vm15, %v718_v52  ;;  %vm3087_vm15 = vcmp.lt.s32.totalorder %v2001_v12, 17 }
 0x231   : > { %v667_v53 = vpop.permute.xlu1 %666 }
 0x232   : > { %v699_v55 = vpop.permute.xlu0 %698  ;;  %v671_v63 = vsel %vm3087_vm15, %v2358_v5, %v667_v53 }
 0x233   : > { %v703_v58 = vsel %vm3081_vm10, %v2356_v4, %v699_v55  ;;  %v702_v59 = vsel %vm3082_vm9, %v699_v55, %v701_v35  ;;  %vm3088_vm10 = vmmov %vm3087_vm15  ;;  %vm3089_vm9 = vnez %v3026_v20  ;;  %vm3093_vm15 = vcmask 1040384  }
 0x234   : > { %1476 = vmatpush.msk.msrb.mxu2 %vm2157_vm0, %v703_v58  ;;  %1486 = vmatpush.msk.msrb.mxu3 %vm3083_vm2, %v702_v59  ;;  %v670_v0 = vsel %vm3088_vm10, %v667_v53, %v669_v54  ;;  %vm3090_vm2 = vcmp.ne.s32.totalorder %v2006_v17, 0  ;;  %vm3094_vm10 = vmmov %vm3093_vm15 }
 0x236   : > { %1477 = vmatpush.msk.msrb.mxu2 %vm3086_vm8, %v687_v60  ;;  %868 = vmatpush.msrb.mxu3 %v686_v62  ;;  %vm3099_vm8 = vcmp.lt.s32.totalorder %v2001_v12, 15 }
 0x238   : > { %1478 = vmatpush.msk.msrb.mxu2 %vm3089_vm9, %v671_v63  ;;  %1487 = vmatpush.msk.msrb.mxu3 %vm3090_vm2, %v670_v0  ;;  %vm3095_vm9 = vcmp.lt.s32.totalorder %v2001_v12, 1 }
 0x239   : > { %1488 = vmatmul.msk.f32.vlgmr.msrb.gmra.mxu3 %vm3091_vm6, %v2448_v2  ;;  %1479 = vmatmul.msk.f32.vlgmr.msrb.gmra.mxu2 %vm3092_vm7, %v2448_v2  ;;  %v695_v7 = vpop.permute.xlu1 %694  ;;  %vm3096_vm2 = vmmov %vm3095_vm9  ;;  %vm3097_vm6 = vcmp.ne.s32.totalorder %v2083_v47, 0  ;;  %vm3098_vm7 = vcmp.ne.s32.totalorder %v2073_v45, 0 }
 0x23a   : > { %v711_v9 = vpop.permute.xlu0 %710  ;;  %1516 = vmatpush.msk.msra.mxu3 %vm3093_vm15, %v1816_v10  ;;  %1507 = vmatpush.msk.msra.mxu2 %vm3094_vm10, %v1816_v10  ;;  %v705_v15 = vsel %vm3099_vm8, %v701_v35, %v695_v7  ;;  %vm3100_vm15 = vmmov %vm3099_vm8  ;;  %vm3102_vm10 = vcmp.lt.s32.totalorder %v2001_v12, 16  ;;  %vm3105_vm8 = vcmp.lt.s32.totalorder %v2001_v12, 17 }
 0x23b   : > { %v721_v11 = vsel %vm3095_vm9, %v717_v43, %v711_v9  ;;  %v720_v13 = vsel %vm3096_vm2, %v711_v9, %v2342_v56  ;;  %v704_v16 = vsel %vm3100_vm15, %v695_v7, %v2356_v4  ;;  %vm3101_vm9 = vcmp.ne.s32.totalorder %v2073_v45, 15  ;;  %vm3103_vm2 = vmmov %vm3102_vm10 }
 0x23c   : > { %1457 = vmatpush.msk.msrb.mxu0 %vm3097_vm6, %v721_v11  ;;  %1467 = vmatpush.msk.msrb.mxu1 %vm3098_vm7, %v720_v13  ;;  %v689_v56 = vsel %vm3102_vm10, %v685_v40, %v679_v14  ;;  %v688_v18 = vsel %vm3103_vm2, %v679_v14, %v2344_v61  ;;  %vm3104_vm6 = vnez %v3029_v25  ;;  %vm3106_vm7 = vmmov %vm3105_vm8  ;;  %vm3107_vm15 = vcmp.ne.s32.totalorder %v2073_v45, 0 }
 0x23d   : > { %vm3110_vm2 = vcmask 1040384  }
 0x23e   : > { %1458 = vmatpush.msk.msrb.mxu0 %vm2219_vm12, %v705_v15  ;;  %1468 = vmatpush.msk.msrb.mxu1 %vm3101_vm9, %v704_v16  ;;  %vm3108_vm9 = vcmask 596992  }
 0x23f   : > { %vm3109_vm10 = vmmov %vm3108_vm9 }
 0x240   : > { %1459 = vmatpush.msk.msrb.mxu0 %vm3104_vm6, %v689_v56  ;;  %828 = vmatpush.msrb.mxu1 %v688_v18 }
 0x242   : > { %v663_v22 = vpop.permute.xlu0 %662 }
 0x243   : > { %v673_v4 = vsel %vm3105_vm8, %v669_v54, %v663_v22  ;;  %v672_v23 = vsel %vm3106_vm7, %v663_v22, %v2358_v5  ;;  %vm3111_vm8 = vmmov %vm3110_vm2  ;;  %vm3112_vm7 = vcmp.lt.s32.totalorder %v2001_v12, 111 }
 0x244   : > { %1460 = vmatpush.msk.msrb.mxu0 %vm2250_vm13, %v673_v4  ;;  %1469 = vmatpush.msk.msrb.mxu1 %vm3107_vm15, %v672_v23  ;;  %vm3113_vm15 = vmmov %vm3112_vm7 }
 0x245   : > { %1461 = vmatmul.msk.f32.vlgmr.msrb.gmra.mxu0 %vm3108_vm9, %v2448_v2  ;;  %1470 = vmatmul.msk.f32.vlgmr.msrb.gmra.mxu1 %vm3109_vm10, %v2448_v2  ;;  %vm3114_vm9 = vcmp.ne.s32.totalorder %v2032_v26, 15  ;;  %vm3115_vm10 = vcmp.lt.s32.totalorder %v2001_v12, 112 }
 0x246   : > { %1489 = vmatpush.msk.msra.mxu0 %vm3110_vm2, %v1816_v10  ;;  %1498 = vmatpush.msk.msra.mxu1 %vm3111_vm8, %v1816_v10  ;;  %vm3116_vm2 = vmmov %vm3115_vm10  ;;  %vm3117_vm8 = vcmp.lt.s32.totalorder %v2001_v12, 113 }
 0x2bc   : > { %v2516_v24 = vpop.f32.mrf.mxu3  ;;  %v2524_v6 = vpop.f32.mrf.mxu2 }
 0x2c2   : > { %v2500_v61 = vpop.f32.mrf.mxu0  ;;  %v2502_v5 = vpop.f32.mrf.mxu1 }
 0x2c3   : > { %986 = vrot.lane.b32.xlu1 %v2500_v61, %s1808_s18  ;;  %924 = vrot.lane.b32.xlu0 %v2502_v5, %s1812_s25 }
 0x2c4   : > { %972 = vrot.lane.b32.xlu2 %v2502_v5, %s1809_s23 }
 0x2cb   : > { %970 = vrot.lane.b32.xlu1 %v2500_v61, %s1809_s23  ;;  %956 = vrot.lane.b32.xlu0 %v2502_v5, %s1810_s22 }
 0x2cc   : > { %892 = vrot.lane.b32.xlu2 %v2502_v5, %s1814_s27 }
 0x2d3   : > { %954 = vrot.lane.b32.xlu1 %v2500_v61, %s1810_s22  ;;  %992 = vrot.lane.b32.xlu0 %v2516_v24, %s1808_s18 }
 0x2d4   : > { %876 = vrot.lane.b32.xlu2 %v2502_v5, %s1815_s28 }
 0x2db   : > { %938 = vrot.lane.b32.xlu1 %v2500_v61, %s1811_s24  ;;  %976 = vrot.lane.b32.xlu0 %v2516_v24, %s1809_s23 }
 0x2dc   : > { %990 = vrot.lane.b32.xlu2 %v2524_v6, %s1808_s18 }
 0x2e3   : > { %960 = vrot.lane.b32.xlu0 %v2516_v24, %s1810_s22  ;;  %988 = vrot.lane.b32.xlu1 %v2502_v5, %s1808_s18 }
 0x2e4   : > { %974 = vrot.lane.b32.xlu2 %v2524_v6, %s1809_s23 }
 0x2eb   : > { %944 = vrot.lane.b32.xlu0 %v2516_v24, %s1811_s24  ;;  %908 = vrot.lane.b32.xlu1 %v2502_v5, %s1813_s26 }
 0x2ec   : > { %958 = vrot.lane.b32.xlu2 %v2524_v6, %s1810_s22 }
 0x2f3   : > { %912 = vrot.lane.b32.xlu0 %v2516_v24, %s1813_s26  ;;  %940 = vrot.lane.b32.xlu1 %v2502_v5, %s1811_s24 }
 0x2f4   : > { %942 = vrot.lane.b32.xlu2 %v2524_v6, %s1811_s24 }
 0x2fb   : > { %894 = vrot.lane.b32.xlu0 %v2524_v6, %s1814_s27  ;;  %926 = vrot.lane.b32.xlu1 %v2524_v6, %s1812_s25 }
 0x2fc   : > { %928 = vrot.lane.b32.xlu2 %v2516_v24, %s1812_s25 }
 0x303   : > { %878 = vrot.lane.b32.xlu0 %v2524_v6, %s1815_s28  ;;  %896 = vrot.lane.b32.xlu1 %v2516_v24, %s1814_s27 }
 0x304   : > { %910 = vrot.lane.b32.xlu2 %v2524_v6, %s1813_s26 }
 0x30b   : > { %906 = vrot.lane.b32.xlu0 %v2500_v61, %s1813_s26  ;;  %880 = vrot.lane.b32.xlu1 %v2516_v24, %s1815_s28 }
 0x30c   : > { %922 = vrot.lane.b32.xlu2 %v2500_v61, %s1812_s25 }
 0x313   : > { %890 = vrot.lane.b32.xlu1 %v2500_v61, %s1814_s27 }
 0x314   : > { %874 = vrot.lane.b32.xlu2 %v2500_v61, %s1815_s28 }
 0x31e   : > { %v973_v8 = vpop.permute.xlu2 %972 }
 0x326   : > { %v2572_v27 = vpop.permute.xlu2 %892 }
 0x32e   : > { %v2574_v28 = vpop.permute.xlu2 %876 }
 0x335   : > { %v987_v29 = vpop.permute.xlu1 %986  ;;  %v2576_v30 = vpop.permute.xlu0 %924 }
 0x336   : > { %v991_v31 = vpop.permute.xlu2 %990 }
 0x33d   : > { %v971_v33 = vpop.permute.xlu1 %970  ;;  %v957_v35 = vpop.permute.xlu0 %956 }
 0x33e   : > { %v975_v36 = vpop.permute.xlu2 %974 }
 0x33f   : > { %v979_v9 = vsel %vm3116_vm2, %v973_v8, %v975_v36 }
 0x345   : > { %v955_v37 = vpop.permute.xlu1 %954  ;;  %v993_v38 = vpop.permute.xlu0 %992 }
 0x346   : > { %v994_v39 = vsel %vm3112_vm7, %v991_v31, %v993_v38  ;;  %v997_v40 = vsel %vm3113_vm15, %v993_v38, %v987_v29  ;;  %v959_v42 = vpop.permute.xlu2 %958  ;;  %vm3118_vm7 = vmmov %vm3117_vm8 }
 0x347   : > { %1517 = vmatpush.msk.msra.mxu3 %vm2021_vm5, %v997_v40  ;;  %1508 = vmatpush.msk.msra.mxu2 %vm3114_vm9, %v994_v39  ;;  %vm3119_vm9 = vmmov %vm3113_vm15 }
 0x34d   : > { %v939_v43 = vpop.permute.xlu1 %938  ;;  %v977_v52 = vpop.permute.xlu0 %976 }
 0x34e   : > { %v981_v53 = vsel %vm3115_vm10, %v977_v52, %v971_v33  ;;  %v943_v54 = vpop.permute.xlu2 %942  ;;  %v978_v55 = vsel %vm3116_vm2, %v975_v36, %v977_v52  ;;  %vm3120_vm10 = vcmp.ne.s32.totalorder %v2083_v47, 15 }
 0x34f   : > { %1050 = vmatpush.msra.mxu2 %v978_v55  ;;  %1518 = vmatpush.msk.msra.mxu3 %vm2012_vm3, %v981_v53 }
 0x355   : > { %v961_v58 = vpop.permute.xlu0 %960  ;;  %v989_v59 = vpop.permute.xlu1 %988 }
 0x356   : > { %v962_v60 = vsel %vm3117_vm8, %v959_v42, %v961_v58  ;;  %v965_v62 = vsel %vm3118_vm7, %v961_v58, %v955_v37  ;;  %v929_v63 = vpop.permute.xlu2 %928  ;;  %v995_v0 = vsel %vm3113_vm15, %v989_v59, %v991_v31  ;;  %v996_v7 = vsel %vm3119_vm9, %v987_v29, %v989_v59  ;;  %vm3122_vm7 = vmmov %vm3116_vm2 }
 0x357   : > { %1490 = vmatpush.msk.msra.mxu0 %vm3120_vm10, %v996_v7  ;;  %1499 = vmatpush.msk.msra.mxu1 %vm2099_vm1, %v995_v0  ;;  %vm3121_vm8 = vcmp.ne.s32.totalorder %v2032_v26, 0  ;;  %v980_v11 = vsel %vm3122_vm7, %v971_v33, %v973_v8  ;;  %vm3123_vm15 = vcmp.lt.s32.totalorder %v2001_v12, 113  ;;  %vm3125_vm10 = vcmp.ne.s32.totalorder %v2083_v47, 0 }
 0x358   : > { %1509 = vmatpush.msk.msra.mxu2 %vm3121_vm8, %v962_v60  ;;  %1519 = vmatpush.msk.msra.mxu3 %vm2054_vm11, %v965_v62  ;;  %v964_v13 = vsel %vm3123_vm15, %v955_v37, %v957_v35  ;;  %vm3124_vm9 = vmmov %vm3123_vm15  ;;  %vm3126_vm2 = vcmp.lt.s32.totalorder %v2001_v12, 127  ;;  %vm3128_vm7 = vcmp.ne.s32.totalorder %v2032_v26, 15  ;;  %vm3129_vm15 = vcmp.ne.s32.totalorder %v2006_v17, 15 }
 0x359   : > { %1010 = vmatpush.msra.mxu0 %v980_v11  ;;  %1500 = vmatpush.msk.msra.mxu1 %vm2088_vm14, %v979_v9  ;;  %v963_v14 = vsel %vm3124_vm9, %v957_v35, %v959_v42  ;;  %vm3127_vm8 = vmmov %vm3126_vm2 }
 0x35a   : > { %vm3130_vm9 = vmmov %vm3126_vm2 }
 0x35b   : > { %1491 = vmatpush.msk.msra.mxu0 %vm3125_vm10, %v964_v13  ;;  %1501 = vmatpush.msk.msra.mxu1 %vm2122_vm4, %v963_v14  ;;  %vm3131_vm10 = vmmov %vm3126_vm2 }
 0x35d   : > { %v945_v15 = vpop.permute.xlu0 %944  ;;  %v909_v16 = vpop.permute.xlu1 %908 }
 0x35e   : > { %v946_v56 = vsel %vm3126_vm2, %v943_v54, %v945_v15  ;;  %v949_v18 = vsel %vm3127_vm8, %v945_v15, %v939_v43  ;;  %v911_v22 = vpop.permute.xlu2 %910  ;;  %vm3132_vm2 = vcmp.ne.s32.totalorder %v2083_v47, 15  ;;  %vm3133_vm8 = vcmp.ne.s32.totalorder %v2073_v45, 15 }
 0x35f   : > { %1510 = vmatpush.msk.msra.mxu2 %vm3128_vm7, %v946_v56  ;;  %1520 = vmatpush.msk.msra.mxu3 %vm3129_vm15, %v949_v18  ;;  %vm3134_vm7 = vcmp.lt.s32.totalorder %v2001_v12, 1 }
 0x360   : > { %vm3135_vm15 = vmmov %vm3134_vm7 }
 0x361   : > { %1053 = vmatpush.msra.mxu2 %v2524_v6  ;;  %1073 = vmatpush.msra.mxu3 %v2516_v24 }
 0x365   : > { %v913_v4 = vpop.permute.xlu0 %912  ;;  %v941_v23 = vpop.permute.xlu1 %940 }
 0x366   : > { %v947_v8 = vsel %vm3130_vm9, %v941_v23, %v943_v54  ;;  %v948_v29 = vsel %vm3131_vm10, %v939_v43, %v941_v23  ;;  %v923_v31 = vpop.permute.xlu2 %922  ;;  %vm3136_vm9 = vcmp.ne.s32.totalorder %v2083_v47, 0  ;;  %vm3137_vm10 = vcmp.ne.s32.totalorder %v2073_v45, 0 }
 0x367   : > { %1492 = vmatpush.msk.msra.mxu0 %vm3132_vm2, %v948_v29  ;;  %1502 = vmatpush.msk.msra.mxu1 %vm3133_vm8, %v947_v8  ;;  %v932_v24 = vsel %vm3134_vm7, %v923_v31, %v2576_v30  ;;  %v933_v6 = vsel %vm3135_vm15, %v929_v63, %v923_v31  ;;  %vm3138_vm2 = vmmov %vm3134_vm7  ;;  %vm3140_vm7 = vcmp.ne.s32.totalorder %v2032_v26, 0  ;;  %vm3141_vm15 = vcmp.ne.s32.totalorder %v2006_v17, 0 }
 0x368   : > { %vm3139_vm8 = vmmov %vm3138_vm2 }
 0x369   : > { %1013 = vmatpush.msra.mxu0 %v2500_v61  ;;  %1033 = vmatpush.msra.mxu1 %v2502_v5 }
 0x36b   : > { %1493 = vmatpush.msk.msra.mxu0 %vm3136_vm9, %v933_v6  ;;  %1503 = vmatpush.msk.msra.mxu1 %vm3137_vm10, %v932_v24  ;;  %vm3142_vm9 = vcmp.lt.s32.totalorder %v2001_v12, 15 }
 0x36c   : > { %v915_v36 = vsel %vm3142_vm9, %v909_v16, %v911_v22  ;;  %vm3143_vm10 = vmmov %vm3142_vm9 }
 0x36d   : > { %v895_v33 = vpop.permute.xlu0 %894  ;;  %v927_v35 = vpop.permute.xlu1 %926  ;;  %v914_v37 = vsel %vm3143_vm10, %v911_v22, %v913_v4  ;;  %vm3149_vm10 = vnez %v3026_v20 }
 0x36e   : > { %v930_v61 = vsel %vm3138_vm2, %v927_v35, %v929_v63  ;;  %v931_v5 = vsel %vm3139_vm8, %v2576_v30, %v927_v35  ;;  %vm3144_vm2 = vcmp.ne.s32.totalorder %v2006_v17, 15  ;;  %vm3145_vm8 = vcmp.lt.s32.totalorder %v2001_v12, 16  ;;  %v875_v58 = vpop.permute.xlu2 %874 }
 0x36f   : > { %1511 = vmatpush.msk.msra.mxu2 %vm3140_vm7, %v931_v5  ;;  %1521 = vmatpush.msk.msra.mxu3 %vm3141_vm15, %v930_v61  ;;  %v899_v30 = vsel %vm3145_vm8, %v2572_v27, %v895_v33  ;;  %vm3146_vm7 = vnez %v3018_v1  ;;  %vm3147_vm15 = vcmp.lt.s32.totalorder %v2001_v12, 17  ;;  %vm3148_vm9 = vmmov %vm3145_vm8  ;;  %vm3151_vm8 = vcmask 1040384  }
 0x371   : > { %1512 = vmatpush.msk.msra.mxu2 %vm2157_vm0, %v915_v36  ;;  %1522 = vmatpush.msk.msra.mxu3 %vm3144_vm2, %v914_v37  ;;  %vm3150_vm2 = vcmask 596992  }
 0x373   : > { %1513 = vmatpush.msk.msra.mxu2 %vm3146_vm7, %v899_v30  ;;  %vm3152_vm7 = vcmp.lt.s32.totalorder %v2001_v12, 15 }
 0x375   : > { %v879_v38 = vpop.permute.xlu0 %878  ;;  %v897_v39 = vpop.permute.xlu1 %896 }
 0x376   : > { %v883_v40 = vsel %vm3147_vm15, %v2574_v28, %v879_v38  ;;  %v898_v42 = vsel %vm3148_vm9, %v895_v33, %v897_v39  ;;  %vm3153_vm15 = vmmov %vm3152_vm7  ;;  %vm3154_vm9 = vcmp.lt.s32.totalorder %v2001_v12, 17 }
 0x377   : > { %1514 = vmatpush.msk.msra.mxu2 %vm3149_vm10, %v883_v40  ;;  %1076 = vmatpush.msra.mxu3 %v898_v42  ;;  %vm3155_vm10 = vcmp.ne.s32.totalorder %v2073_v45, 15 }
 0x378   : > { %1515 = vmatmul.msk.f32.vlgmr.msra.gmra.mxu2 %vm3150_vm2, %v2448_v2  ;;  %vm3156_vm2 = vcmp.ne.s32.totalorder %v2006_v17, 0 }
 0x379   : > { %1543 = vmatpush.msk.msrb.mxu2 %vm3151_vm8, %v1816_v10  ;;  %vm3157_vm8 = vcmask 596992  }
 0x37d   : > { %v907_v43 = vpop.permute.xlu0 %906  ;;  %v881_v52 = vpop.permute.xlu1 %880 }
 0x37e   : > { %v916_v53 = vsel %vm3152_vm7, %v907_v43, %v909_v16  ;;  %v917_v54 = vsel %vm3153_vm15, %v913_v4, %v907_v43  ;;  %v882_v55 = vsel %vm3154_vm9, %v879_v38, %v881_v52  ;;  %vm3158_vm7 = vcmask 1040384  }
 0x37f   : > { %1494 = vmatpush.msk.msra.mxu0 %vm2219_vm12, %v917_v54  ;;  %1504 = vmatpush.msk.msra.mxu1 %vm3155_vm10, %v916_v53  ;;  %vm3159_vm15 = vcmp.lt.s32.totalorder %v2001_v12, 16  ;;  %vm3161_vm10 = vcmp.lt.s32.totalorder %v2001_v12, 17 }
 0x380   : > { %1523 = vmatpush.msk.msra.mxu3 %vm3156_vm2, %v882_v55  ;;  %vm3160_vm9 = vmmov %vm3159_vm15  ;;  %v884_v63 = vsel %vm3161_vm10, %v875_v58, %v2574_v28 }
 0x381   : > { %1524 = vmatmul.msk.f32.vlgmr.msra.gmra.mxu3 %vm3157_vm8, %v2448_v2  ;;  %vm3162_vm2 = vmmov %vm3161_vm10  ;;  %vm3163_vm8 = vcmp.ne.s32.totalorder %v2073_v45, 0 }
 0x382   : > { %1552 = vmatpush.msk.msrb.mxu3 %vm3158_vm7, %v1816_v10  ;;  %v885_v0 = vsel %vm3162_vm2, %v881_v52, %v875_v58  ;;  %vm3164_vm7 = vcmask 596992   ;;  %vm3168_vm2 = vcmp.lt.s32.totalorder %v2001_v12, 111 }
 0x385   : > { %v891_v59 = vpop.permute.xlu1 %890 }
 0x386   : > { %v901_v60 = vsel %vm3159_vm15, %v897_v39, %v891_v59  ;;  %v900_v62 = vsel %vm3160_vm9, %v891_v59, %v2572_v27  ;;  %vm3165_vm15 = vmmov %vm3164_vm7  ;;  %vm3166_vm9 = vcmask 1040384  }
 0x387   : > { %1495 = vmatpush.msk.msra.mxu0 %vm3104_vm6, %v901_v60  ;;  %1036 = vmatpush.msra.mxu1 %v900_v62  ;;  %vm3167_vm10 = vmmov %vm3166_vm9 }
 0x389   : > { %1496 = vmatpush.msk.msra.mxu0 %vm2250_vm13, %v885_v0  ;;  %1505 = vmatpush.msk.msra.mxu1 %vm3163_vm8, %v884_v63  ;;  %vm3169_vm8 = vcmp.lt.s32.totalorder %v2001_v12, 112 }
 0x38a   : > { %1497 = vmatmul.msk.f32.vlgmr.msra.gmra.mxu0 %vm3164_vm7, %v2448_v2  ;;  %1506 = vmatmul.msk.f32.vlgmr.msra.gmra.mxu1 %vm3165_vm15, %v2448_v2  ;;  %vm3170_vm7 = vcmp.lt.s32.totalorder %v2001_v12, 113  ;;  %vm3172_vm15 = vmmov %vm3168_vm2 }
 0x38b   : > { %1525 = vmatpush.msk.msrb.mxu0 %vm3166_vm9, %v1816_v10  ;;  %1534 = vmatpush.msk.msrb.mxu1 %vm3167_vm10, %v1816_v10  ;;  %vm3174_vm9 = vcmp.ne.s32.totalorder %v2032_v26, 15  ;;  %vm3176_vm10 = vmmov %vm3168_vm2 }
 0x3fb   : > { %v1059_v13 = vpop.f32.mrf.mxu2 }
 0x3fc   : > { %v2749_v14 = vadd.f32 %v1059_v13, %v2294_v50 }
 0x404   : > { %v1079_v10 = vpop.f32.mrf.mxu3 }
 0x405   : > { %v1080_v11 = vadd.f32 %v1079_v10, %v2286_v49 }
 0x407   : > { %v1019_v27 = vpop.f32.mrf.mxu0  ;;  %v1039_v28 = vpop.f32.mrf.mxu1 }
 0x408   : > { %v2725_v7 = vadd.f32 %v1019_v27, %v2270_v44  ;;  %v2728_v9 = vadd.f32 %v1039_v28, %v2272_v46 }
 0x40a   : > { %1194 = vrot.lane.b32.xlu0 %v2725_v7, %s1808_s18  ;;  %1132 = vrot.lane.b32.xlu2 %v2728_v9, %s1812_s25 }
 0x40b   : > { %1180 = vrot.lane.b32.xlu1 %v2728_v9, %s1809_s23 }
 0x412   : > { %1178 = vrot.lane.b32.xlu0 %v2725_v7, %s1809_s23  ;;  %1164 = vrot.lane.b32.xlu2 %v2728_v9, %s1810_s22 }
 0x413   : > { %1100 = vrot.lane.b32.xlu1 %v2728_v9, %s1814_s27 }
 0x41a   : > { %1162 = vrot.lane.b32.xlu0 %v2725_v7, %s1810_s22  ;;  %1200 = vrot.lane.b32.xlu2 %v1080_v11, %s1808_s18 }
 0x41b   : > { %1084 = vrot.lane.b32.xlu1 %v2728_v9, %s1815_s28 }
 0x422   : > { %1146 = vrot.lane.b32.xlu0 %v2725_v7, %s1811_s24  ;;  %1184 = vrot.lane.b32.xlu2 %v1080_v11, %s1809_s23 }
 0x423   : > { %1198 = vrot.lane.b32.xlu1 %v2749_v14, %s1808_s18 }
 0x42a   : > { %1168 = vrot.lane.b32.xlu2 %v1080_v11, %s1810_s22  ;;  %1196 = vrot.lane.b32.xlu0 %v2728_v9, %s1808_s18  ;;  %s1750_s18 = scalar_lea.hbm %s1749_s21, 32 }
 0x42b   : > { %1182 = vrot.lane.b32.xlu1 %v2749_v14, %s1809_s23  ;;  %p1751_p1 = scmp.ne.s32.totalorder %s1749_s21, %s1750_s18 }
 0x42d   : > { %p1752_p4 = pnand %p1751_p1, %p1903_p3 }
 0x42f   : > { %p1753_p8 = pneg %p1752_p4 }
 0x432   : > { %1152 = vrot.lane.b32.xlu2 %v1080_v11, %s1811_s24  ;;  %1116 = vrot.lane.b32.xlu0 %v2728_v9, %s1813_s26 }
 0x433   : > { %1166 = vrot.lane.b32.xlu1 %v2749_v14, %s1810_s22 }
 0x43a   : > { %1120 = vrot.lane.b32.xlu2 %v1080_v11, %s1813_s26  ;;  %1148 = vrot.lane.b32.xlu0 %v2728_v9, %s1811_s24 }
 0x43b   : > { %1150 = vrot.lane.b32.xlu1 %v2749_v14, %s1811_s24  ;;  %s1754_s24 = scalar_lea.hbm %s2974_s3, 64 }
 0x43c   : > { %p1756_p2 = scmp.lt.s32.totalorder %s1754_s24, %s1750_s18 }
 0x43e   : > { %p1757_p10 = por %p1756_p2, %p1755_p9 }
 0x440   : > { %p1758_p11 = pnand %p1757_p10, %p1753_p8 }
 0x442   : > { %1102 = vrot.lane.b32.xlu2 %v2749_v14, %s1814_s27  ;;  %1134 = vrot.lane.b32.xlu0 %v2749_v14, %s1812_s25 }
 0x443   : > { %1136 = vrot.lane.b32.xlu1 %v1080_v11, %s1812_s25 }
 0x44a   : > { %1086 = vrot.lane.b32.xlu2 %v2749_v14, %s1815_s28  ;;  %1104 = vrot.lane.b32.xlu0 %v1080_v11, %s1814_s27 }
 0x44b   : > { %1118 = vrot.lane.b32.xlu1 %v2749_v14, %s1813_s26 }
 0x452   : > { %1114 = vrot.lane.b32.xlu2 %v2725_v7, %s1813_s26  ;;  %1088 = vrot.lane.b32.xlu0 %v1080_v11, %s1815_s28 }
 0x453   : > { %1130 = vrot.lane.b32.xlu1 %v2725_v7, %s1812_s25 }
 0x45a   : > { %1098 = vrot.lane.b32.xlu0 %v2725_v7, %s1814_s27 }
 0x45b   : > { %1082 = vrot.lane.b32.xlu1 %v2725_v7, %s1815_s28 }
 0x464   : > { %v2790_v15 = vpop.permute.xlu2 %1132 }
 0x46c   : > { %v1165_v16 = vpop.permute.xlu2 %1164 }
 0x474   : > { %v1201_v56 = vpop.permute.xlu2 %1200 }
 0x47c   : > { %v1195_v18 = vpop.permute.xlu0 %1194  ;;  %v1185_v23 = vpop.permute.xlu2 %1184 }
 0x47d   : > { %v1205_v22 = vsel %vm3168_vm2, %v1201_v56, %v1195_v18  ;;  %v1181_v4 = vpop.permute.xlu1 %1180 }
 0x47e   : > { %1553 = vmatpush.msk.msrb.mxu3 %vm2021_vm5, %v1205_v22  ;;  %vm3171_vm5 = vcmp.lt.s32.totalorder %v2001_v12, 127 }
 0x484   : > { %v1179_v8 = vpop.permute.xlu0 %1178  ;;  %v1169_v24 = vpop.permute.xlu2 %1168 }
 0x485   : > { %v1189_v29 = vsel %vm3169_vm8, %v1185_v23, %v1179_v8  ;;  %v2798_v31 = vpop.permute.xlu1 %1100 }
 0x486   : > { %1554 = vmatpush.msk.msrb.mxu3 %vm2012_vm3, %v1189_v29  ;;  %vm3173_vm3 = vcmp.ne.s32.totalorder %v2006_v17, 15 }
 0x48c   : > { %v1163_v6 = vpop.permute.xlu0 %1162  ;;  %v1153_v21 = vpop.permute.xlu2 %1152 }
 0x48d   : > { %v1173_v33 = vsel %vm3170_vm7, %v1169_v24, %v1163_v6  ;;  %v2804_v35 = vpop.permute.xlu1 %1084  ;;  %vm3178_vm7 = vmmov %vm3169_vm8 }
 0x48e   : > { %1555 = vmatpush.msk.msrb.mxu3 %vm2054_vm11, %v1173_v33  ;;  %vm3175_vm11 = vmmov %vm3168_vm2  ;;  %vm3177_vm2 = vcmp.ne.s32.totalorder %v2083_v47, 15 }
 0x494   : > { %v1147_v61 = vpop.permute.xlu0 %1146  ;;  %v1121_v55 = vpop.permute.xlu2 %1120 }
 0x495   : > { %v1157_v5 = vsel %vm3171_vm5, %v1153_v21, %v1147_v61  ;;  %v1199_v36 = vpop.permute.xlu1 %1198  ;;  %vm3179_vm5 = vmmov %vm3178_vm7 }
 0x496   : > { %v1202_v19 = vsel %vm3172_vm15, %v1199_v36, %v1201_v56  ;;  %1556 = vmatpush.msk.msrb.mxu3 %vm3173_vm3, %v1157_v5  ;;  %v1188_v42 = vsel %vm3179_vm5, %v1179_v8, %v1181_v4  ;;  %vm3180_vm15 = vcmp.lt.s32.totalorder %v2001_v12, 113  ;;  %vm3181_vm3 = vcmp.ne.s32.totalorder %v2083_v47, 0 }
 0x497   : > { %1544 = vmatpush.msk.msrb.mxu2 %vm3174_vm9, %v1202_v19  ;;  %v1172_v43 = vsel %vm3180_vm15, %v1163_v6, %v1165_v16  ;;  %vm3191_vm5 = vcmp.lt.s32.totalorder %v2001_v12, 1 }
 0x498   : > { %1281 = vmatpush.msrb.mxu3 %v1080_v11 }
 0x49c   : > { %v1197_v37 = vpop.permute.xlu0 %1196  ;;  %v1103_v57 = vpop.permute.xlu2 %1102 }
 0x49d   : > { %v1183_v30 = vpop.permute.xlu1 %1182  ;;  %v1203_v34 = vsel %vm3175_vm11, %v1197_v37, %v1199_v36  ;;  %v1204_v38 = vsel %vm3176_vm10, %v1195_v18, %v1197_v37  ;;  %vm3185_vm11 = vcmp.lt.s32.totalorder %v2001_v12, 127 }
 0x49e   : > { %1526 = vmatpush.msk.msrb.mxu0 %vm3177_vm2, %v1204_v38  ;;  %1535 = vmatpush.msk.msrb.mxu1 %vm2099_vm1, %v1203_v34  ;;  %v1186_v39 = vsel %vm3169_vm8, %v1183_v30, %v1185_v23  ;;  %v1187_v40 = vsel %vm3178_vm7, %v1181_v4, %v1183_v30  ;;  %vm3182_vm1 = vmmov %vm3180_vm15  ;;  %vm3188_vm8 = vcmp.ne.s32.totalorder %v2083_v47, 15  ;;  %vm3189_vm7 = vcmp.ne.s32.totalorder %v2073_v45, 15 }
 0x49f   : > { %1258 = vmatpush.msrb.mxu2 %v1186_v39  ;;  %vm3183_vm9 = vmmov %vm3182_vm1 }
 0x4a0   : > { %1218 = vmatpush.msrb.mxu0 %v1188_v42  ;;  %1536 = vmatpush.msk.msrb.mxu1 %vm2088_vm14, %v1187_v40  ;;  %vm3184_vm14 = vcmp.ne.s32.totalorder %v2032_v26, 0  ;;  %vm3186_vm10 = vmmov %vm3185_vm11 }
 0x4a1   : > { %vm3187_vm2 = vmmov %vm3186_vm10 }
 0x4a2   : > { %1527 = vmatpush.msk.msrb.mxu0 %vm3181_vm3, %v1172_v43  ;;  %vm3192_vm15 = vmmov %vm3191_vm5 }
 0x4a3   : > { %vm3193_vm3 = vmmov %vm3184_vm14 }
 0x4a4   : > { %v1117_v51 = vpop.permute.xlu0 %1116 }
 0x4a5   : > { %v1167_v52 = vpop.permute.xlu1 %1166 }
 0x4a6   : > { %v1170_v53 = vsel %vm3182_vm1, %v1167_v52, %v1169_v24  ;;  %v1171_v54 = vsel %vm3183_vm9, %v1165_v16, %v1167_v52  ;;  %vm3194_vm1 = vcmp.ne.s32.totalorder %v2006_v17, 0  ;;  %vm3195_vm9 = vcmp.lt.s32.totalorder %v2001_v12, 15 }
 0x4a7   : > { %1537 = vmatpush.msk.msrb.mxu1 %vm2122_vm4, %v1171_v54  ;;  %1545 = vmatpush.msk.msrb.mxu2 %vm3184_vm14, %v1170_v53  ;;  %vm3190_vm4 = vcmp.ne.s32.totalorder %v2032_v26, 15  ;;  %vm3196_vm14 = vmmov %vm3195_vm9 }
 0x4ac   : > { %v1149_v48 = vpop.permute.xlu0 %1148 }
 0x4ad   : > { %v1151_v58 = vpop.permute.xlu1 %1150  ;;  %v1156_v59 = vsel %vm3185_vm11, %v1147_v61, %v1149_v48  ;;  %vm3197_vm11 = vcmp.ne.s32.totalorder %v2006_v17, 15 }
 0x4ae   : > { %v1154_v60 = vsel %vm3186_vm10, %v1151_v58, %v1153_v21  ;;  %v1155_v62 = vsel %vm3187_vm2, %v1149_v48, %v1151_v58  ;;  %1528 = vmatpush.msk.msrb.mxu0 %vm3188_vm8, %v1156_v59  ;;  %vm3198_vm10 = vcmp.lt.s32.totalorder %v2001_v12, 16  ;;  %vm3200_vm8 = vnez %v3018_v1 }
 0x4af   : > { %1538 = vmatpush.msk.msrb.mxu1 %vm3189_vm7, %v1155_v62  ;;  %1546 = vmatpush.msk.msrb.mxu2 %vm3190_vm4, %v1154_v60  ;;  %v1107_v26 = vsel %vm3198_vm10, %v2798_v31, %v1103_v57  ;;  %vm3199_vm2 = vmmov %vm3198_vm10  ;;  %vm3201_vm7 = vcmp.lt.s32.totalorder %v2001_v12, 17  ;;  %vm3203_vm4 = vcmask 596992  }
 0x4b0   : > { %1221 = vmatpush.msrb.mxu0 %v2725_v7  ;;  %v1087_v7 = vpop.permute.xlu2 %1086 }
 0x4b1   : > { %1241 = vmatpush.msrb.mxu1 %v2728_v9  ;;  %1261 = vmatpush.msrb.mxu2 %v2749_v14  ;;  %v1091_v16 = vsel %vm3201_vm7, %v2804_v35, %v1087_v7 }
 0x4b4   : > { %v1135_v63 = vpop.permute.xlu0 %1134 }
 0x4b5   : > { %v1137_v0 = vpop.permute.xlu1 %1136  ;;  %v1139_v27 = vsel %vm3191_vm5, %v2790_v15, %v1135_v63  ;;  %vm3204_vm5 = vmmov %vm3201_vm7  ;;  %vm3212_vm7 = vcmp.lt.s32.totalorder %v2001_v12, 16 }
 0x4b6   : > { %v1138_v28 = vsel %vm3192_vm15, %v1135_v63, %v1137_v0  ;;  %1547 = vmatpush.msk.msrb.mxu2 %vm3193_vm3, %v1139_v27  ;;  %vm3205_vm3 = vmmov %vm3192_vm15 }
 0x4b7   : > { %1557 = vmatpush.msk.msrb.mxu3 %vm3194_vm1, %v1138_v28 }
 0x4b8   : > { %v1115_v56 = vpop.permute.xlu2 %1114 }
 0x4bc   : > { %v1105_v10 = vpop.permute.xlu0 %1104 }
 0x4bd   : > { %v1119_v9 = vpop.permute.xlu1 %1118  ;;  %v1106_v14 = vsel %vm3199_vm2, %v1103_v57, %v1105_v10  ;;  %vm3210_vm2 = vmmov %vm3203_vm4 }
 0x4be   : > { %v1122_v11 = vsel %vm3195_vm9, %v1119_v9, %v1121_v55  ;;  %v1123_v13 = vsel %vm3196_vm14, %v1117_v51, %v1119_v9  ;;  %vm3206_vm9 = vcmp.ne.s32.totalorder %v2083_v47, 0  ;;  %vm3207_vm14 = vcmp.ne.s32.totalorder %v2073_v45, 0 }
 0x4bf   : > { %1548 = vmatpush.msk.msrb.mxu2 %vm2157_vm0, %v1123_v13  ;;  %1558 = vmatpush.msk.msrb.mxu3 %vm3197_vm11, %v1122_v11  ;;  %vm3202_vm0 = vnez %v3026_v20  ;;  %vm3208_vm11 = vcmp.lt.s32.totalorder %v2001_v12, 15 }
 0x4c0   : > { %v1124_v20 = vsel %vm3208_vm11, %v1115_v56, %v1117_v51  ;;  %vm3209_vm10 = vmmov %vm3208_vm11 }
 0x4c1   : > { %1549 = vmatpush.msk.msrb.mxu2 %vm3200_vm8, %v1107_v26  ;;  %1284 = vmatpush.msrb.mxu3 %v1106_v14  ;;  %v1125_v23 = vsel %vm3209_vm10, %v1121_v55, %v1115_v56  ;;  %vm3211_vm8 = vcmp.ne.s32.totalorder %v2073_v45, 15 }
 0x4c3   : > { %1550 = vmatpush.msk.msrb.mxu2 %vm3202_vm0, %v1091_v16  ;;  %vm3213_vm0 = vmmov %vm3212_vm7 }
 0x4c4   : > { %1551 = vmatmul.msk.f32.vlgmr.msrb.gmra.mxu2 %vm3203_vm4, %v2448_v2  ;;  %v1089_v3 = vpop.permute.xlu0 %1088  ;;  %vm3215_vm4 = vmmov %vm3204_vm5 }
 0x4c5   : > { %v1131_v18 = vpop.permute.xlu1 %1130  ;;  %v1090_v22 = vsel %vm3204_vm5, %v1087_v7, %v1089_v3 }
 0x4c6   : > { %v1140_v1 = vsel %vm3192_vm15, %v1131_v18, %v2790_v15  ;;  %v1141_v4 = vsel %vm3205_vm3, %v1137_v0, %v1131_v18  ;;  %1559 = vmatpush.msk.msrb.mxu3 %vm3194_vm1, %v1090_v22  ;;  %vm3217_vm15 = vmmov %vm3210_vm2 }
 0x4c7   : > { %1529 = vmatpush.msk.msrb.mxu0 %vm3206_vm9, %v1141_v4  ;;  %1539 = vmatpush.msk.msrb.mxu1 %vm3207_vm14, %v1140_v1  ;;  %vm3218_vm3 = vmmov %vm3210_vm2 }
 0x4c8   : > { %1560 = vmatmul.msk.f32.vlgmr.msrb.gmra.mxu3 %vm3210_vm2, %v2448_v2 }
 0x4c9   : > { %1530 = vmatpush.msk.msrb.mxu0 %vm2219_vm12, %v1125_v23  ;;  %1540 = vmatpush.msk.msrb.mxu1 %vm3211_vm8, %v1124_v20  ;;  %vm3214_vm12 = vmmov %vm3204_vm5 }
 0x4ca   : > { %vm3216_vm5 = vmmov %vm3207_vm14 }
 0x4cc   : > { %v1099_v17 = vpop.permute.xlu0 %1098 }
 0x4cd   : > { %v1083_v47 = vpop.permute.xlu1 %1082  ;;  %v1109_v15 = vsel %vm3212_vm7, %v1105_v10, %v1099_v17  ;;  %v1108_v8 = vsel %vm3213_vm0, %v1099_v17, %v2798_v31 }
 0x4ce   : > { %1531 = vmatpush.msk.msrb.mxu0 %vm3104_vm6, %v1109_v15  ;;  %1244 = vmatpush.msrb.mxu1 %v1108_v8  ;;  %v1092_v32 = vsel %vm3214_vm12, %v1083_v47, %v2804_v35  ;;  %v1093_v29 = vsel %vm3215_vm4, %v1089_v3, %v1083_v47 }
 0x4d0   : > { %1532 = vmatpush.msk.msrb.mxu0 %vm2250_vm13, %v1093_v29  ;;  %1541 = vmatpush.msk.msrb.mxu1 %vm3216_vm5, %v1092_v32 }
 0x4d1   : > { %1533 = vmatmul.msk.f32.vlgmr.msrb.gmra.mxu0 %vm3217_vm15, %v2448_v2  ;;  %1542 = vmatmul.msk.f32.vlgmr.msrb.gmra.mxu1 %vm3218_vm3, %v2448_v2 }
 0x547   : > { %v1267_v25 = vpop.f32.mrf.mxu2 }
 0x548   : > { %v1268_v31 = vadd.f32 %v1267_v25, %v2294_v50 }
 0x54a   : > { %1292 = vst [vmem:[%s217_s5 + $0x10] sm:$0xff] %v1268_v31 }
 0x54b   : > { %v1287_v12 = vpop.f32.mrf.mxu3 }
 0x54c   : > { %v1288_v45 = vadd.f32 %v1287_v12, %v2286_v49 }
 0x54e   : > { %1293 = vst [vmem:[%s217_s5 + $0x18] sm:$0xff] %v1288_v45  ;;  %v1227_v41 = vpop.f32.mrf.mxu0  ;;  %v1247_v2 = vpop.f32.mrf.mxu1 }
 0x54f   : > { %v1228_v24 = vadd.f32 %v1227_v41, %v2270_v44  ;;  %v1248_v50 = vadd.f32 %v1247_v2, %v2272_v46 }
 0x551   : > { %1290 = vst [vmem:[%s217_s5] sm:$0xff] %v1228_v24 }
 0x552   : > { %1291 = vst [vmem:[%s217_s5 + $0x8] sm:$0xff] %v1248_v50 }
 0x553   : > { %1761 = shalt.err (!%p1758_p11)
}
 0x554   : > { %1578 = dma.vmem_to_hbm [thread:$0]  (%p1903_p3), %s1309_s17, 512, %s1311_s20, %s1295_s16  }
 0x555 PF: > { %s1322_s9 = sand.u32 1, %s1792_s12   ;;  %p3219_p12 = scmp.ge.s32.totalorder %s1804_s15, 2 }
 0x556   : > { %s1323_s27 = scalar_lea.sflag [#allocation4], %s1322_s9 }
 0x557   : > { %p1592_p13 = pnand %p3219_p12, %p1872_p6 }
 0x559   : > { %p1593_p0 = pneg %p1592_p13 }
 0x55b   : > { %1787 = dma.done.wait (%p1593_p0), %s1323_s27, 512  }
 0x55c   : > { %1789 = vsyncadd (%p1593_p0), %s1323_s27, 4294966784  ;;  %p17_p5 = scmp.ge.s32.totalorder %s1893_s4, 4   ;;  %s3220_s12 = smov %s1796_s13 }
 0x55d   : > { %s3221_s13 = smov %s1800_s14  ;;  %s3222_s14 = smov %s1909_s8 }
 0x55e   : > { %s3223_s15 = smov %s1893_s4  ;;  %19 = sbr.rel (!%p17_p5) target bundleno = 6 (0x6), region = 86 }
 0x563   :  { %1329 = vsyncpa [#allocation3], 1 }
 0x564   :  { %1331 = vsyncpa [#allocation3 + $0x1], 1 }
 0x565   :  { %1332 = vsyncpa [#allocation6], 1 }
 0x566   :  { %1333 = vsyncpa [#allocation4], 1 }
 0x567   :  { %1335 = vsyncpa [#allocation4 + $0x1], 1 }

</bundles_post_ra>
